<compile_context>
chip_gen: v7x
topology: tpu7x:2x2x1
jax: 0.10.0
libtpu: 0.0.40
codegen_flags: <defaults>
</compile_context>

<pallas_src>
import math

import jax
import jax.numpy as jnp
from jax.experimental import pallas as pl
from jax.experimental.pallas import tpu as pltpu


# ----------------------------------------------------------------------------- kernel ---

def make_kernel(layout, TB, c_s, T, FL, KS, in_channels):
    """Kernel for one batch tile of TB elements (c_s EEG channels, T timesteps each)."""
    N = TB * c_s * T           # lane-flattened signal axis
    F0, F1, F2 = FL
    K0, K1, K2 = KS
    inv_in = 1.0 / float(in_channels)

    def kernel(x_ref, slab_ref, pool_ref, out_ref):
        def get(name):
            off, r, c = layout[name]
            return slab_ref[pl.ds(off, r), pl.ds(0, c)]

        # local time index of every lane (per (batch, eeg-channel) signal)
        tloc = jax.lax.broadcasted_iota(jnp.int32, (1, N), 1) % T

        # edge-validity masks, shared by the three depthwise convs
        offs = set()
        for K in (K0, K1, K2):
            p_l = (K - 1) // 2
            offs.update(k - p_l for k in range(K) if k != p_l)
        edge_ok = {d: (tloc >= -d) if d < 0 else (tloc < T - d) for d in offs}

        def relu(v):
            return jnp.maximum(v, 0.0)

        def dw_conv(a, w, b, K):
            # depthwise 'same' conv (PyTorch cross-correlation) on lane-flattened signals:
            # K static taps -> roll (XLU) + edge mask + multiply-add; mask also kills any
            # cross-signal leakage at the T-boundaries of the flattened lane axis.
            p_l = (K - 1) // 2
            acc = None
            for k in range(K):
                d = k - p_l
                wcol = w[:, k:k + 1]                       # (F, 1)
                if d == 0:
                    contrib = a * wcol
                else:
                    shifted = pltpu.roll(a, (-d) % N, 1)
                    contrib = jnp.where(edge_ok[d], shifted, 0.0) * wcol
                acc = contrib if acc is None else acc + contrib
            return acc + b

        a = x_ref[0]                                       # (1, N): all signals, lane-flat
        # sep1 (bn1 + depthwise/pointwise BNs folded into weights).
        # The SeparableConv blocks end in ReLU, so the module's ELU is identity -> dropped.
        h = relu(dw_conv(a, get("dw1_w"), get("dw1_b"), K0))
        h = relu(get("pw1_w") * h + get("pw1_b"))          # 1x1 conv with C_in=1: broadcast
        # sep2
        h = relu(dw_conv(h, get("dw2_w"), get("dw2_b"), K1))
        h = relu(jnp.dot(get("pw2_w"), h, preferred_element_type=jnp.float32) + get("pw2_b"))
        # sep3
        h = relu(dw_conv(h, get("dw3_w"), get("dw3_b"), K2))
        h = relu(jnp.dot(get("pw3_w"), h, preferred_element_type=jnp.float32) + get("pw3_b"))

        # AdaptiveAvgPool1d(1): per-signal time mean as one MXU pass with a pooling matrix
        feat = jnp.dot(h, pool_ref[...], preferred_element_type=jnp.float32)   # (F2, TB*c_s)
        feat3 = feat.reshape(F2, TB, c_s)
        s_sum = jnp.sum(feat3, axis=2)                     # (F2, TB) sum over eeg channels
        s_max = jnp.max(feat3, axis=2)                     # (F2, TB) max over eeg channels
        catv = jnp.concatenate([s_sum, s_max, s_sum * inv_in], axis=0)          # (3*F2, TB)

        logits = jnp.dot(get("fc_w"), catv,
                         preferred_element_type=jnp.float32) + get("fc_b")      # (4, TB)
        # TODO(synk): Dropout(0.3) is identity in eval mode; training-mode RNG masking not implemented.
        lmax = jnp.max(logits, axis=0, keepdims=True)
        e = jnp.exp(logits - lmax)
        probs = e / jnp.sum(e, axis=0, keepdims=True)      # softmax over the 4 classes

        # lane-dense (8, 128) output block: rows = classes (padded), lanes = batch tile.
        blk = jnp.concatenate([probs, jnp.zeros((8 - 4, TB), jnp.float32)], axis=0)
        blk = jnp.concatenate([blk, jnp.zeros((8, 128 - TB), jnp.float32)], axis=1)
        out_ref[0] = blk.astype(out_ref.dtype)

    return kernel


# ------------------------------------------------------------------------ host helpers ---

def init_params(key, FL, KS):
    """Deterministic raw parameters (shapes as in the PyTorch module)."""
    ks = jax.random.split(key, 14)

    def u(k, shape, scale=0.2):
        return jax.random.uniform(k, shape, jnp.float32, -1.0, 1.0) * scale

    F0, F1, F2 = FL
    K0, K1, K2 = KS
    return {
        "dw1_w": u(ks[0], (1, K0)),   "dw1_b": u(ks[1], (1,)),
        "pw1_w": u(ks[2], (F0, 1)),   "pw1_b": u(ks[3], (F0,)),
        "dw2_w": u(ks[4], (F0, K1)),  "dw2_b": u(ks[5], (F0,)),
        "pw2_w": u(ks[6], (F1, F0)),  "pw2_b": u(ks[7], (F1,)),
        "dw3_w": u(ks[8], (F1, K2)),  "dw3_b": u(ks[9], (F1,)),
        "pw3_w": u(ks[10], (F2, F1)), "pw3_b": u(ks[11], (F2,)),
        "fc_w":  u(ks[12], (4, 3 * F2)),
        "fc_b":  u(ks[13], (4,)),
    }


def fold_params(p):
    """Fold eval-mode BNs (gamma=1, beta=0, mean=0, var=1, eps=1e-5) + bn1 into the convs."""
    eps = 1e-5
    s_bn = 1.0 / math.sqrt(1.0 + eps)

    def col(v):
        return v.reshape(-1, 1)

    return {
        # bn1 (pre-conv, shift=0) and the depthwise-BN (post-conv) fold into dw1
        "dw1_w": p["dw1_w"] * (s_bn * s_bn), "dw1_b": col(p["dw1_b"]) * s_bn,
        "pw1_w": p["pw1_w"] * s_bn,          "pw1_b": col(p["pw1_b"]) * s_bn,
        "dw2_w": p["dw2_w"] * s_bn,          "dw2_b": col(p["dw2_b"]) * s_bn,
        "pw2_w": p["pw2_w"] * s_bn,          "pw2_b": col(p["pw2_b"]) * s_bn,
        "dw3_w": p["dw3_w"] * s_bn,          "dw3_b": col(p["dw3_b"]) * s_bn,
        "pw3_w": p["pw3_w"] * s_bn,          "pw3_b": col(p["pw3_b"]) * s_bn,
        "fc_w":  p["fc_w"],                  "fc_b":  col(p["fc_b"]),
    }


def pack_weights(folded):
    """Pack all weights into one (rows, 128*k) f32 slab (8-aligned row offsets)."""
    names = ["dw1_w", "dw1_b", "pw1_w", "pw1_b", "dw2_w", "dw2_b",
             "pw2_w", "pw2_b", "dw3_w", "dw3_b", "pw3_w", "pw3_b", "fc_w", "fc_b"]
    max_c = max(int(folded[n].shape[1]) for n in names)
    lane_w = 128 * ((max_c + 127) // 128)
    layout, blocks, off = {}, [], 0
    for n in names:
        a = jnp.asarray(folded[n], jnp.float32)
        r, c = a.shape
        r_pad = ((r + 7) // 8) * 8
        layout[n] = (off, r, c)
        blocks.append(jnp.pad(a, ((0, r_pad - r), (0, lane_w - c))))
        off += r_pad
    return jnp.concatenate(blocks, axis=0), layout


def build_pool(num_signals, T):
    """(num_signals*T, num_signals) matrix that averages each signal's T lanes."""
    n = jnp.arange(num_signals * T, dtype=jnp.int32)
    sig = (n // T)[:, None]
    col = jnp.arange(num_signals, dtype=jnp.int32)[None, :]
    return jnp.where(sig == col, 1.0 / T, 0.0).astype(jnp.float32)


def pick_batch_tile(b_s, max_tb=8):
    """Largest batch tile <= max_tb dividing b_s, preferring an even grid (2-TC chips)."""
    divs = [d for d in range(1, min(b_s, max_tb) + 1) if b_s % d == 0]
    even = [d for d in divs if (b_s // d) % 2 == 0]
    return max(even) if even else max(divs)


def spatial_network2_forward(x, raw_params, in_channels, FL, KS, batch_tile=None):
    b_s, c_s, t_s = x.shape
    tb = batch_tile if batch_tile is not None else pick_batch_tile(b_s)
    assert b_s % tb == 0 and tb <= 128
    grid_len = b_s // tb
    N = tb * c_s * t_s

    folded = fold_params(raw_params)
    slab, layout = pack_weights(folded)
    pool = build_pool(tb * c_s, t_s)
    x3 = x.reshape(grid_len, 1, N)          # lane-flatten (batch-tile, channel, time)

    kernel = make_kernel(layout, tb, c_s, t_s, FL, KS, in_channels)

    out = pl.pallas_call(
        kernel,
        out_shape=jax.ShapeDtypeStruct((grid_len, 8, 128), jnp.float32),
        grid=(grid_len,),
        in_specs=[
            pl.BlockSpec((1, 1, N), lambda g: (g, 0, 0)),
            pl.BlockSpec(slab.shape, lambda g: (0, 0)),
            pl.BlockSpec(pool.shape, lambda g: (0, 0)),
        ],
        out_specs=pl.BlockSpec((1, 8, 128), lambda g: (g, 0, 0)),
        compiler_params=pltpu.CompilerParams(
            dimension_semantics=("parallel",),
            vmem_limit_bytes=32 * 1024 * 1024,
        ),
    )(x3, slab, pool)

    probs = out[:, :4, :tb]                                # (grid_len, 4, tb)
    return jnp.transpose(probs, (0, 2, 1)).reshape(b_s, 4)


# ------------------------------------------------------------------- pure-JAX reference ---

def reference_forward(x, p, in_channels, FL, KS):
    eps = 1e-5
    s_bn = 1.0 / math.sqrt(1.0 + eps)      # eval-mode BN: x / sqrt(var + eps)
    b_s, c_s, t_s = x.shape
    a = x.reshape(b_s * c_s, 1, t_s) * s_bn                 # bn1

    def dw(a, w, b, K):
        pad_l = (K - 1) // 2
        ap = jnp.pad(a, ((0, 0), (0, 0), (pad_l, K - 1 - pad_l)))
        out = jnp.zeros_like(a)
        for k in range(K):
            out = out + ap[:, :, k:k + t_s] * w[None, :, k:k + 1]
        return out + b[None, :, None]

    def pw(a, w, b):
        return jnp.einsum("oc,bct->bot", w, a) + b[None, :, None]

    def sep(a, dw_w, dw_b, pw_w, pw_b, K):
        a = jax.nn.relu(dw(a, dw_w, dw_b, K) * s_bn)        # depthwise -> BN -> ReLU
        a = jax.nn.relu(pw(a, pw_w, pw_b) * s_bn)           # pointwise -> BN -> ReLU
        return a

    a = jax.nn.elu(sep(a, p["dw1_w"], p["dw1_b"], p["pw1_w"], p["pw1_b"], KS[0]))
    a = jax.nn.elu(sep(a, p["dw2_w"], p["dw2_b"], p["pw2_w"], p["pw2_b"], KS[1]))
    a = jax.nn.elu(sep(a, p["dw3_w"], p["dw3_b"], p["pw3_w"], p["pw3_b"], KS[2]))

    feat = jnp.mean(a, axis=2).reshape(b_s, c_s, FL[2])     # GAP -> (B, C, F2)
    s = feat.sum(axis=1)
    m = feat.max(axis=1)
    cat = jnp.concatenate([s, m, s / in_channels], axis=1)
    logits = cat @ p["fc_w"].T + p["fc_b"][None, :]
    return jax.nn.softmax(logits, axis=1)                   # dropout is identity in eval


# --------------------------------------------------------------------------------- main ---

if __name__ == "__main__":
    # x: (batch, eeg_channels, temporal_len)
    b_s, c_s, t_s = 2, 4, 128
    FL = (8, 16, 32)     # filter counts of the three separable convs
    KS = (7, 5, 3)       # kernel sizes ('same' padding)

    key = jax.random.PRNGKey(0)
    kx, kp = jax.random.split(key)
    x = jax.random.normal(kx, (b_s, c_s, t_s), jnp.float32)
    params = init_params(kp, FL, KS)

    out = spatial_network2_forward(x, params, in_channels=c_s, FL=FL, KS=KS)
    out = jax.block_until_ready(out)

    ref = jax.block_until_ready(reference_forward(x, params, in_channels=c_s, FL=FL, KS=KS))

    assert out.shape == (b_s, 4)
    assert bool(jnp.all(jnp.isfinite(out)))
    assert bool(jnp.all(jnp.abs(jnp.sum(out, axis=1) - 1.0) < 1e-5))
    assert bool(jnp.max(jnp.abs(out - ref)) < 1e-4), float(jnp.max(jnp.abs(out - ref)))
    print("KERNEL_OK")
</pallas_src>

<mosaic_0001>
module attributes {stable_mosaic.version = 11 : i64} {
  func.func @kernel(%arg0: i32, %arg1: memref<1x1x512xf32, #tpu.memory_space<vmem>>, %arg2: memref<192x128xf32, #tpu.memory_space<vmem>>, %arg3: memref<512x4xf32, #tpu.memory_space<vmem>>, %arg4: memref<1x8x128xf32, #tpu.memory_space<vmem>>) attributes {dimension_semantics = [#tpu.dimension_semantics<parallel>], iteration_bounds = array<i64: 2>, scalar_prefetch = 0 : i64, scratch_operands = 0 : i64, tpu.core_type = #tpu.core_type<tc>, window_params = [{transform_indices = @transform_0, window_bounds = array<i64: 1, 1, 512>}, {pipeline_mode = #tpu.pipeline_mode<synchronous>, transform_indices = @transform_1, window_bounds = array<i64: 192, 128>}, {pipeline_mode = #tpu.pipeline_mode<synchronous>, transform_indices = @transform_2, window_bounds = array<i64: 512, 4>}, {transform_indices = @transform_3, window_bounds = array<i64: 1, 8, 128>}]} {
    %0 = tpu.iota {dimensions = array<i32: 1>} : vector<1x512xi32>
    %c128_i32 = arith.constant 128 : i32
    %c0_i32 = arith.constant 0 : i32
    %1 = arith.cmpi eq, %c128_i32, %c0_i32 : i32
    %c1_i32 = arith.constant 1 : i32
    %2 = arith.select %1, %c1_i32, %c128_i32 : i32
    %3 = vector.broadcast %2 : i32 to vector<1x512xi32>
    %4 = arith.remsi %0, %3 : vector<1x512xi32>
    %c0_i32_0 = arith.constant 0 : i32
    %5 = vector.broadcast %c0_i32_0 : i32 to vector<1x512xi32>
    %6 = arith.cmpi ne, %4, %5 : vector<1x512xi32>
    %c0_i32_1 = arith.constant 0 : i32
    %7 = vector.broadcast %c0_i32_1 : i32 to vector<1x512xi32>
    %8 = arith.cmpi slt, %4, %7 : vector<1x512xi32>
    %c0_i32_2 = arith.constant 0 : i32
    %9 = arith.cmpi slt, %2, %c0_i32_2 : i32
    %10 = vector.broadcast %9 : i1 to vector<1x512xi1>
    %11 = vector.broadcast %10 : vector<1x512xi1> to vector<1x512xi1>
    %12 = arith.xori %8, %11 : vector<1x512xi1>
    %13 = arith.andi %12, %6 : vector<1x512xi1>
    %14 = vector.broadcast %2 : i32 to vector<1x512xi32>
    %15 = arith.addi %4, %14 : vector<1x512xi32>
    %16 = arith.select %13, %15, %4 : vector<1x512xi1>, vector<1x512xi32>
    %c127_i32 = arith.constant 127 : i32
    %17 = vector.broadcast %c127_i32 : i32 to vector<1x512xi32>
    %18 = arith.cmpi slt, %16, %17 : vector<1x512xi32>
    %c126_i32 = arith.constant 126 : i32
    %19 = vector.broadcast %c126_i32 : i32 to vector<1x512xi32>
    %20 = arith.cmpi slt, %16, %19 : vector<1x512xi32>
    %c125_i32 = arith.constant 125 : i32
    %21 = vector.broadcast %c125_i32 : i32 to vector<1x512xi32>
    %22 = arith.cmpi slt, %16, %21 : vector<1x512xi32>
    %c1_i32_3 = arith.constant 1 : i32
    %23 = vector.broadcast %c1_i32_3 : i32 to vector<1x512xi32>
    %24 = arith.cmpi sge, %16, %23 : vector<1x512xi32>
    %c3_i32 = arith.constant 3 : i32
    %25 = vector.broadcast %c3_i32 : i32 to vector<1x512xi32>
    %26 = arith.cmpi sge, %16, %25 : vector<1x512xi32>
    %c2_i32 = arith.constant 2 : i32
    %27 = vector.broadcast %c2_i32 : i32 to vector<1x512xi32>
    %28 = arith.cmpi sge, %16, %27 : vector<1x512xi32>
    %c0 = arith.constant 0 : index
    %c0_4 = arith.constant 0 : index
    %c0_5 = arith.constant 0 : index
    %29 = vector.load %arg1[%c0, %c0_4, %c0_5] : memref<1x1x512xf32, #tpu.memory_space<vmem>>, vector<1x1x512xf32>
    %30 = vector.shape_cast %29 : vector<1x1x512xf32> to vector<1x512xf32>
    %c0_6 = arith.constant 0 : index
    %c0_7 = arith.constant 0 : index
    %31 = vector.load %arg2[%c0_6, %c0_7] : memref<192x128xf32, #tpu.memory_space<vmem>>, vector<1x7xf32>
    %c8 = arith.constant 8 : index
    %c0_8 = arith.constant 0 : index
    %32 = vector.load %arg2[%c8, %c0_8] : memref<192x128xf32, #tpu.memory_space<vmem>>, vector<1x1xf32>
    %33 = vector.extract_strided_slice %31 {offsets = [0, 0], sizes = [1, 1], strides = [1, 1]} : vector<1x7xf32> to vector<1x1xf32>
    %c3_i32_9 = arith.constant 3 : i32
    %34 = tpu.dynamic_rotate %30 by %c3_i32_9 dim 1 : vector<1x512xf32>, i32 -> vector<1x512xf32>
    %cst = arith.constant 0.000000e+00 : f32
    %35 = vector.broadcast %cst : f32 to vector<1x512xf32>
    %36 = arith.select %26, %34, %35 : vector<1x512xi1>, vector<1x512xf32>
    %37 = vector.broadcast %33 : vector<1x1xf32> to vector<1x512xf32>
    %38 = arith.mulf %36, %37 : vector<1x512xf32>
    %39 = vector.extract_strided_slice %31 {offsets = [0, 1], sizes = [1, 1], strides = [1, 1]} : vector<1x7xf32> to vector<1x1xf32>
    %c2_i32_10 = arith.constant 2 : i32
    %40 = tpu.dynamic_rotate %30 by %c2_i32_10 dim 1 : vector<1x512xf32>, i32 -> vector<1x512xf32>
    %cst_11 = arith.constant 0.000000e+00 : f32
    %41 = vector.broadcast %cst_11 : f32 to vector<1x512xf32>
    %42 = arith.select %28, %40, %41 : vector<1x512xi1>, vector<1x512xf32>
    %43 = vector.broadcast %39 : vector<1x1xf32> to vector<1x512xf32>
    %44 = arith.mulf %42, %43 : vector<1x512xf32>
    %45 = arith.addf %38, %44 : vector<1x512xf32>
    %46 = vector.extract_strided_slice %31 {offsets = [0, 2], sizes = [1, 1], strides = [1, 1]} : vector<1x7xf32> to vector<1x1xf32>
    %c1_i32_12 = arith.constant 1 : i32
    %47 = tpu.dynamic_rotate %30 by %c1_i32_12 dim 1 : vector<1x512xf32>, i32 -> vector<1x512xf32>
    %cst_13 = arith.constant 0.000000e+00 : f32
    %48 = vector.broadcast %cst_13 : f32 to vector<1x512xf32>
    %49 = arith.select %24, %47, %48 : vector<1x512xi1>, vector<1x512xf32>
    %50 = vector.broadcast %46 : vector<1x1xf32> to vector<1x512xf32>
    %51 = arith.mulf %49, %50 : vector<1x512xf32>
    %52 = arith.addf %45, %51 : vector<1x512xf32>
    %53 = vector.extract_strided_slice %31 {offsets = [0, 3], sizes = [1, 1], strides = [1, 1]} : vector<1x7xf32> to vector<1x1xf32>
    %54 = vector.broadcast %53 : vector<1x1xf32> to vector<1x512xf32>
    %55 = arith.mulf %30, %54 : vector<1x512xf32>
    %56 = arith.addf %52, %55 : vector<1x512xf32>
    %57 = vector.extract_strided_slice %31 {offsets = [0, 4], sizes = [1, 1], strides = [1, 1]} : vector<1x7xf32> to vector<1x1xf32>
    %c511_i32 = arith.constant 511 : i32
    %58 = tpu.dynamic_rotate %30 by %c511_i32 dim 1 : vector<1x512xf32>, i32 -> vector<1x512xf32>
    %cst_14 = arith.constant 0.000000e+00 : f32
    %59 = vector.broadcast %cst_14 : f32 to vector<1x512xf32>
    %60 = arith.select %18, %58, %59 : vector<1x512xi1>, vector<1x512xf32>
    %61 = vector.broadcast %57 : vector<1x1xf32> to vector<1x512xf32>
    %62 = arith.mulf %60, %61 : vector<1x512xf32>
    %63 = arith.addf %56, %62 : vector<1x512xf32>
    %64 = vector.extract_strided_slice %31 {offsets = [0, 5], sizes = [1, 1], strides = [1, 1]} : vector<1x7xf32> to vector<1x1xf32>
    %c510_i32 = arith.constant 510 : i32
    %65 = tpu.dynamic_rotate %30 by %c510_i32 dim 1 : vector<1x512xf32>, i32 -> vector<1x512xf32>
    %cst_15 = arith.constant 0.000000e+00 : f32
    %66 = vector.broadcast %cst_15 : f32 to vector<1x512xf32>
    %67 = arith.select %20, %65, %66 : vector<1x512xi1>, vector<1x512xf32>
    %68 = vector.broadcast %64 : vector<1x1xf32> to vector<1x512xf32>
    %69 = arith.mulf %67, %68 : vector<1x512xf32>
    %70 = arith.addf %63, %69 : vector<1x512xf32>
    %71 = vector.extract_strided_slice %31 {offsets = [0, 6], sizes = [1, 1], strides = [1, 1]} : vector<1x7xf32> to vector<1x1xf32>
    %c509_i32 = arith.constant 509 : i32
    %72 = tpu.dynamic_rotate %30 by %c509_i32 dim 1 : vector<1x512xf32>, i32 -> vector<1x512xf32>
    %cst_16 = arith.constant 0.000000e+00 : f32
    %73 = vector.broadcast %cst_16 : f32 to vector<1x512xf32>
    %74 = arith.select %22, %72, %73 : vector<1x512xi1>, vector<1x512xf32>
    %75 = vector.broadcast %71 : vector<1x1xf32> to vector<1x512xf32>
    %76 = arith.mulf %74, %75 : vector<1x512xf32>
    %77 = arith.addf %70, %76 : vector<1x512xf32>
    %78 = vector.broadcast %32 : vector<1x1xf32> to vector<1x512xf32>
    %79 = arith.addf %77, %78 : vector<1x512xf32>
    %cst_17 = arith.constant 0.000000e+00 : f32
    %80 = vector.broadcast %cst_17 : f32 to vector<1x512xf32>
    %81 = arith.maximumf %79, %80 : vector<1x512xf32>
    %c16 = arith.constant 16 : index
    %c0_18 = arith.constant 0 : index
    %82 = vector.load %arg2[%c16, %c0_18] : memref<192x128xf32, #tpu.memory_space<vmem>>, vector<8x1xf32>
    %83 = vector.broadcast %82 : vector<8x1xf32> to vector<8x512xf32>
    %84 = vector.broadcast %81 : vector<1x512xf32> to vector<8x512xf32>
    %85 = arith.mulf %83, %84 : vector<8x512xf32>
    %c24 = arith.constant 24 : index
    %c0_19 = arith.constant 0 : index
    %86 = vector.load %arg2[%c24, %c0_19] : memref<192x128xf32, #tpu.memory_space<vmem>>, vector<8x1xf32>
    %87 = vector.broadcast %86 : vector<8x1xf32> to vector<8x512xf32>
    %88 = arith.addf %85, %87 : vector<8x512xf32>
    %cst_20 = arith.constant 0.000000e+00 : f32
    %89 = vector.broadcast %cst_20 : f32 to vector<8x512xf32>
    %90 = arith.maximumf %88, %89 : vector<8x512xf32>
    %c32 = arith.constant 32 : index
    %c0_21 = arith.constant 0 : index
    %91 = vector.load %arg2[%c32, %c0_21] : memref<192x128xf32, #tpu.memory_space<vmem>>, vector<8x5xf32>
    %c40 = arith.constant 40 : index
    %c0_22 = arith.constant 0 : index
    %92 = vector.load %arg2[%c40, %c0_22] : memref<192x128xf32, #tpu.memory_space<vmem>>, vector<8x1xf32>
    %93 = vector.extract_strided_slice %91 {offsets = [0, 0], sizes = [8, 1], strides = [1, 1]} : vector<8x5xf32> to vector<8x1xf32>
    %c2_i32_23 = arith.constant 2 : i32
    %94 = tpu.dynamic_rotate %90 by %c2_i32_23 dim 1 : vector<8x512xf32>, i32 -> vector<8x512xf32>
    %cst_24 = arith.constant 0.000000e+00 : f32
    %95 = vector.shape_cast %28 : vector<1x512xi1> to vector<1x512xi1>
    %96 = vector.broadcast %95 : vector<1x512xi1> to vector<8x512xi1>
    %97 = vector.broadcast %cst_24 : f32 to vector<8x512xf32>
    %98 = arith.select %96, %94, %97 : vector<8x512xi1>, vector<8x512xf32>
    %99 = vector.broadcast %93 : vector<8x1xf32> to vector<8x512xf32>
    %100 = arith.mulf %98, %99 : vector<8x512xf32>
    %101 = vector.extract_strided_slice %91 {offsets = [0, 1], sizes = [8, 1], strides = [1, 1]} : vector<8x5xf32> to vector<8x1xf32>
    %c1_i32_25 = arith.constant 1 : i32
    %102 = tpu.dynamic_rotate %90 by %c1_i32_25 dim 1 : vector<8x512xf32>, i32 -> vector<8x512xf32>
    %cst_26 = arith.constant 0.000000e+00 : f32
    %103 = vector.shape_cast %24 : vector<1x512xi1> to vector<1x512xi1>
    %104 = vector.broadcast %103 : vector<1x512xi1> to vector<8x512xi1>
    %105 = vector.broadcast %cst_26 : f32 to vector<8x512xf32>
    %106 = arith.select %104, %102, %105 : vector<8x512xi1>, vector<8x512xf32>
    %107 = vector.broadcast %101 : vector<8x1xf32> to vector<8x512xf32>
    %108 = arith.mulf %106, %107 : vector<8x512xf32>
    %109 = arith.addf %100, %108 : vector<8x512xf32>
    %110 = vector.extract_strided_slice %91 {offsets = [0, 2], sizes = [8, 1], strides = [1, 1]} : vector<8x5xf32> to vector<8x1xf32>
    %111 = vector.broadcast %110 : vector<8x1xf32> to vector<8x512xf32>
    %112 = arith.mulf %90, %111 : vector<8x512xf32>
    %113 = arith.addf %109, %112 : vector<8x512xf32>
    %114 = vector.extract_strided_slice %91 {offsets = [0, 3], sizes = [8, 1], strides = [1, 1]} : vector<8x5xf32> to vector<8x1xf32>
    %c511_i32_27 = arith.constant 511 : i32
    %115 = tpu.dynamic_rotate %90 by %c511_i32_27 dim 1 : vector<8x512xf32>, i32 -> vector<8x512xf32>
    %cst_28 = arith.constant 0.000000e+00 : f32
    %116 = vector.shape_cast %18 : vector<1x512xi1> to vector<1x512xi1>
    %117 = vector.broadcast %116 : vector<1x512xi1> to vector<8x512xi1>
    %118 = vector.broadcast %cst_28 : f32 to vector<8x512xf32>
    %119 = arith.select %117, %115, %118 : vector<8x512xi1>, vector<8x512xf32>
    %120 = vector.broadcast %114 : vector<8x1xf32> to vector<8x512xf32>
    %121 = arith.mulf %119, %120 : vector<8x512xf32>
    %122 = arith.addf %113, %121 : vector<8x512xf32>
    %123 = vector.extract_strided_slice %91 {offsets = [0, 4], sizes = [8, 1], strides = [1, 1]} : vector<8x5xf32> to vector<8x1xf32>
    %c510_i32_29 = arith.constant 510 : i32
    %124 = tpu.dynamic_rotate %90 by %c510_i32_29 dim 1 : vector<8x512xf32>, i32 -> vector<8x512xf32>
    %cst_30 = arith.constant 0.000000e+00 : f32
    %125 = vector.shape_cast %20 : vector<1x512xi1> to vector<1x512xi1>
    %126 = vector.broadcast %125 : vector<1x512xi1> to vector<8x512xi1>
    %127 = vector.broadcast %cst_30 : f32 to vector<8x512xf32>
    %128 = arith.select %126, %124, %127 : vector<8x512xi1>, vector<8x512xf32>
    %129 = vector.broadcast %123 : vector<8x1xf32> to vector<8x512xf32>
    %130 = arith.mulf %128, %129 : vector<8x512xf32>
    %131 = arith.addf %122, %130 : vector<8x512xf32>
    %132 = vector.broadcast %92 : vector<8x1xf32> to vector<8x512xf32>
    %133 = arith.addf %131, %132 : vector<8x512xf32>
    %cst_31 = arith.constant 0.000000e+00 : f32
    %134 = vector.broadcast %cst_31 : f32 to vector<8x512xf32>
    %135 = arith.maximumf %133, %134 : vector<8x512xf32>
    %c48 = arith.constant 48 : index
    %c0_32 = arith.constant 0 : index
    %136 = vector.load %arg2[%c48, %c0_32] : memref<192x128xf32, #tpu.memory_space<vmem>>, vector<16x8xf32>
    %cst_33 = arith.constant dense<0.000000e+00> : vector<16x512xf32>
    %137 = tpu.matmul %136, %135, %cst_33 {dimension_numbers = #tpu.dot_dimension_numbers<[1], [0], [0], [1], [0, 0, 1, 1], [], []>} : vector<16x8xf32>, vector<8x512xf32>, vector<16x512xf32> -> vector<16x512xf32>
    %c64 = arith.constant 64 : index
    %c0_34 = arith.constant 0 : index
    %138 = vector.load %arg2[%c64, %c0_34] : memref<192x128xf32, #tpu.memory_space<vmem>>, vector<16x1xf32>
    %139 = vector.broadcast %138 : vector<16x1xf32> to vector<16x512xf32>
    %140 = arith.addf %137, %139 : vector<16x512xf32>
    %cst_35 = arith.constant 0.000000e+00 : f32
    %141 = vector.broadcast %cst_35 : f32 to vector<16x512xf32>
    %142 = arith.maximumf %140, %141 : vector<16x512xf32>
    %c80 = arith.constant 80 : index
    %c0_36 = arith.constant 0 : index
    %143 = vector.load %arg2[%c80, %c0_36] : memref<192x128xf32, #tpu.memory_space<vmem>>, vector<16x3xf32>
    %c96 = arith.constant 96 : index
    %c0_37 = arith.constant 0 : index
    %144 = vector.load %arg2[%c96, %c0_37] : memref<192x128xf32, #tpu.memory_space<vmem>>, vector<16x1xf32>
    %145 = vector.extract_strided_slice %143 {offsets = [0, 0], sizes = [16, 1], strides = [1, 1]} : vector<16x3xf32> to vector<16x1xf32>
    %c1_i32_38 = arith.constant 1 : i32
    %146 = tpu.dynamic_rotate %142 by %c1_i32_38 dim 1 : vector<16x512xf32>, i32 -> vector<16x512xf32>
    %cst_39 = arith.constant 0.000000e+00 : f32
    %147 = vector.shape_cast %24 : vector<1x512xi1> to vector<1x512xi1>
    %148 = vector.broadcast %147 : vector<1x512xi1> to vector<16x512xi1>
    %149 = vector.broadcast %cst_39 : f32 to vector<16x512xf32>
    %150 = arith.select %148, %146, %149 : vector<16x512xi1>, vector<16x512xf32>
    %151 = vector.broadcast %145 : vector<16x1xf32> to vector<16x512xf32>
    %152 = arith.mulf %150, %151 : vector<16x512xf32>
    %153 = vector.extract_strided_slice %143 {offsets = [0, 1], sizes = [16, 1], strides = [1, 1]} : vector<16x3xf32> to vector<16x1xf32>
    %154 = vector.broadcast %153 : vector<16x1xf32> to vector<16x512xf32>
    %155 = arith.mulf %142, %154 : vector<16x512xf32>
    %156 = arith.addf %152, %155 : vector<16x512xf32>
    %157 = vector.extract_strided_slice %143 {offsets = [0, 2], sizes = [16, 1], strides = [1, 1]} : vector<16x3xf32> to vector<16x1xf32>
    %c511_i32_40 = arith.constant 511 : i32
    %158 = tpu.dynamic_rotate %142 by %c511_i32_40 dim 1 : vector<16x512xf32>, i32 -> vector<16x512xf32>
    %cst_41 = arith.constant 0.000000e+00 : f32
    %159 = vector.shape_cast %18 : vector<1x512xi1> to vector<1x512xi1>
    %160 = vector.broadcast %159 : vector<1x512xi1> to vector<16x512xi1>
    %161 = vector.broadcast %cst_41 : f32 to vector<16x512xf32>
    %162 = arith.select %160, %158, %161 : vector<16x512xi1>, vector<16x512xf32>
    %163 = vector.broadcast %157 : vector<16x1xf32> to vector<16x512xf32>
    %164 = arith.mulf %162, %163 : vector<16x512xf32>
    %165 = arith.addf %156, %164 : vector<16x512xf32>
    %166 = vector.broadcast %144 : vector<16x1xf32> to vector<16x512xf32>
    %167 = arith.addf %165, %166 : vector<16x512xf32>
    %cst_42 = arith.constant 0.000000e+00 : f32
    %168 = vector.broadcast %cst_42 : f32 to vector<16x512xf32>
    %169 = arith.maximumf %167, %168 : vector<16x512xf32>
    %c112 = arith.constant 112 : index
    %c0_43 = arith.constant 0 : index
    %170 = vector.load %arg2[%c112, %c0_43] : memref<192x128xf32, #tpu.memory_space<vmem>>, vector<32x16xf32>
    %cst_44 = arith.constant dense<0.000000e+00> : vector<32x512xf32>
    %171 = tpu.matmul %170, %169, %cst_44 {dimension_numbers = #tpu.dot_dimension_numbers<[1], [0], [0], [1], [0, 0, 1, 1], [], []>} : vector<32x16xf32>, vector<16x512xf32>, vector<32x512xf32> -> vector<32x512xf32>
    %c144 = arith.constant 144 : index
    %c0_45 = arith.constant 0 : index
    %172 = vector.load %arg2[%c144, %c0_45] : memref<192x128xf32, #tpu.memory_space<vmem>>, vector<32x1xf32>
    %173 = vector.broadcast %172 : vector<32x1xf32> to vector<32x512xf32>
    %174 = arith.addf %171, %173 : vector<32x512xf32>
    %cst_46 = arith.constant 0.000000e+00 : f32
    %175 = vector.broadcast %cst_46 : f32 to vector<32x512xf32>
    %176 = arith.maximumf %174, %175 : vector<32x512xf32>
    %c0_47 = arith.constant 0 : index
    %c0_48 = arith.constant 0 : index
    %177 = vector.load %arg3[%c0_47, %c0_48] : memref<512x4xf32, #tpu.memory_space<vmem>>, vector<512x4xf32>
    %cst_49 = arith.constant dense<0.000000e+00> : vector<32x4xf32>
    %178 = tpu.matmul %176, %177, %cst_49 {dimension_numbers = #tpu.dot_dimension_numbers<[1], [0], [0], [1], [0, 0, 1, 1], [], []>} : vector<32x512xf32>, vector<512x4xf32>, vector<32x4xf32> -> vector<32x4xf32>
    %179 = vector.shape_cast %178 : vector<32x4xf32> to vector<32x1x4xf32>
    %cst_50 = arith.constant dense<0.000000e+00> : vector<32x1xf32>
    %180 = vector.multi_reduction <add>, %179, %cst_50 [2] : vector<32x1x4xf32> to vector<32x1xf32>
    %cst_51 = arith.constant dense<0xFF800000> : vector<32x1xf32>
    %181 = vector.multi_reduction <maximumf>, %179, %cst_51 [2] : vector<32x1x4xf32> to vector<32x1xf32>
    %cst_52 = arith.constant 2.500000e-01 : f32
    %182 = vector.broadcast %cst_52 : f32 to vector<32x1xf32>
    %183 = arith.mulf %180, %182 : vector<32x1xf32>
    %184 = tpu.concatenate %180, %181, %183 in 0 : vector<32x1xf32>, vector<32x1xf32>, vector<32x1xf32> -> vector<96x1xf32>
    %c176 = arith.constant 176 : index
    %c0_53 = arith.constant 0 : index
    %185 = vector.load %arg2[%c176, %c0_53] : memref<192x128xf32, #tpu.memory_space<vmem>>, vector<4x96xf32>
    %cst_54 = arith.constant dense<0.000000e+00> : vector<4x1xf32>
    %186 = tpu.matmul %185, %184, %cst_54 {dimension_numbers = #tpu.dot_dimension_numbers<[1], [0], [0], [1], [0, 0, 1, 1], [], []>} : vector<4x96xf32>, vector<96x1xf32>, vector<4x1xf32> -> vector<4x1xf32>
    %c184 = arith.constant 184 : index
    %c0_55 = arith.constant 0 : index
    %187 = vector.load %arg2[%c184, %c0_55] : memref<192x128xf32, #tpu.memory_space<vmem>>, vector<4x1xf32>
    %188 = arith.addf %186, %187 : vector<4x1xf32>
    %cst_56 = arith.constant dense<0xFF800000> : vector<1xf32>
    %189 = vector.multi_reduction <maximumf>, %188, %cst_56 [0] : vector<4x1xf32> to vector<1xf32>
    %190 = vector.shape_cast %189 : vector<1xf32> to vector<1x1xf32>
    %191 = vector.broadcast %190 : vector<1x1xf32> to vector<4x1xf32>
    %192 = arith.subf %188, %191 : vector<4x1xf32>
    %193 = math.exp %192 : vector<4x1xf32>
    %cst_57 = arith.constant dense<0.000000e+00> : vector<1xf32>
    %194 = vector.multi_reduction <add>, %193, %cst_57 [0] : vector<4x1xf32> to vector<1xf32>
    %195 = vector.shape_cast %194 : vector<1xf32> to vector<1x1xf32>
    %196 = vector.broadcast %195 : vector<1x1xf32> to vector<4x1xf32>
    %197 = arith.divf %193, %196 : vector<4x1xf32>
    %cst_58 = arith.constant 0.000000e+00 : f32
    %198 = vector.broadcast %cst_58 : f32 to vector<4x1xf32>
    %199 = tpu.concatenate %197, %198 in 0 : vector<4x1xf32>, vector<4x1xf32> -> vector<8x1xf32>
    %cst_59 = arith.constant 0.000000e+00 : f32
    %200 = vector.broadcast %cst_59 : f32 to vector<8x127xf32>
    %201 = tpu.concatenate %199, %200 in 1 : vector<8x1xf32>, vector<8x127xf32> -> vector<8x128xf32>
    %c0_60 = arith.constant 0 : index
    %c0_61 = arith.constant 0 : index
    %c0_62 = arith.constant 0 : index
    %202 = vector.load %arg4[%c0_60, %c0_61, %c0_62] : memref<1x8x128xf32, #tpu.memory_space<vmem>>, vector<1x8x128xf32>
    %203 = vector.shape_cast %202 : vector<1x8x128xf32> to vector<8x128xf32>
    %204 = vector.shape_cast %201 : vector<8x128xf32> to vector<1x8x128xf32>
    tpu.vector_store %arg4[%c0_60, %c0_61, %c0_62], %204 {strides = array<i32>} : memref<1x8x128xf32, #tpu.memory_space<vmem>>, vector<1x8x128xf32>,
    return
  }
  func.func @transform_0(%arg0: i32) -> (i32, i32, i32) {
    %c0_i32 = arith.constant 0 : i32
    %c0_i32_0 = arith.constant 0 : i32
    %c0_i32_1 = arith.constant 0 : i32
    return %arg0, %c0_i32, %c0_i32_0 : i32, i32, i32
  }
  func.func @transform_1(%arg0: i32) -> (i32, i32) {
    %c0_i32 = arith.constant 0 : i32
    %c0_i32_0 = arith.constant 0 : i32
    %c0_i32_1 = arith.constant 0 : i32
    return %c0_i32, %c0_i32_0 : i32, i32
  }
  func.func @transform_2(%arg0: i32) -> (i32, i32) {
    %c0_i32 = arith.constant 0 : i32
    %c0_i32_0 = arith.constant 0 : i32
    %c0_i32_1 = arith.constant 0 : i32
    return %c0_i32, %c0_i32_0 : i32, i32
  }
  func.func @transform_3(%arg0: i32) -> (i32, i32, i32) {
    %c0_i32 = arith.constant 0 : i32
    %c0_i32_0 = arith.constant 0 : i32
    %c0_i32_1 = arith.constant 0 : i32
    return %arg0, %c0_i32, %c0_i32_0 : i32, i32, i32
  }
}

</mosaic_0001>

<bundles_post_ra>
// kernel: tpu_custom_call.1
= control target key start
LH: loop header
LB: loop body
LE: loop exit
PB: predicated region body
PF: predicated region fallthrough
CT: control target
= control target key end

     0   :  { %8 = vsyncpa [#allocation3], 0  ;;  %s4177_s0 = inlined_call_operand.vmem [shape: f32[2,1,512], index: 0, kind: input, shape index: {}]   ;;  %s4178_s1 = inlined_call_operand.vmem [shape: f32[192,128], index: 1, kind: input, shape index: {}]   ;;  %s4179_s2 = inlined_call_operand.vmem [shape: f32[512,4], index: 2, kind: input, shape index: {}]   ;;  %s4180_s3 = inlined_call_operand.hbm [shape: f32[2,8,128], index: 3, kind: output, shape index: {}]  }
   0x1   :  { %10 = vsyncpa [#allocation3 + $0x1], 0  ;;  %s2842_s12 = smov 0   ;;  %s2844_s13 = smov 0  }
   0x2   :  { %s2846_s14 = smov 0   ;;  %s2848_s15 = smov 0  }
   0x3 LB: > { %s2863_s16 = sadd.s32 4294967295, %s2802_s15   ;;  %s2419_s17 = sadd.s32 4294967294, %s2802_s15   ;;  %s2802_s15 = sphi %s2848_s15, %s4202_s15   ;;  %s2798_s14 = sphi %s2846_s14, %s4201_s14   ;;  %s2794_s13 = sphi %s2844_s13, %s4200_s13   ;;  %s2790_s12 = sphi %s2842_s12, %s4199_s12  }
   0x4   : > { %s2867_s18 = sadd.s32 1, %s2802_s15   ;;  %s91_s19 = sadd.s32 1, %s2798_s14 }
   0x5   : > { %s88_s20 = ssub.s32 %s2802_s15, %s2867_s18  ;;  %p101_p0 = scmp.ne.s32.totalorder %s2798_s14, %s2794_s13 }
   0x6   : > { %p89_p1 = scmp.eq.s32.totalorder %s88_s20, 0  ;;  %p102_p2 = scmp.eq.s32.totalorder %s2863_s16, 1 }
   0x7   : > { %p107_p3 = scmp.ne.s32.totalorder %s2794_s13, %s2790_s12  ;;  %p108_p4 = scmp.eq.s32.totalorder %s2419_s17, 1 }
   0x8   : > { %s2878_s21 = scalar_select %p89_p1, %s2798_s14, %s91_s19  }
   0x9   : > { %p2880_p5 = por %p102_p2, %p101_p0  ;;  %p2884_p6 = por %p108_p4, %p107_p3 }
   0xa   : > { %p2422_p7 = scmp.ge.s32.totalorder %s2802_s15, 1  ;;  %p139_p8 = scmp.lt.s32.totalorder %s2802_s15, 3 }
   0xc   : > { %p140_p9 = pnand %p2422_p7, %p139_p8 }
   0xd   : > { %v244_v0 = vld [vmem:[%s4178_s1] sm:$0x1] (!%p140_p9)  ;;  %p162_p10 = scmp.lt.s32.totalorder (!%p140_p9), %s2863_s16, 1  ;;  %v166_v1 = vlaneseq (!%p140_p9)  ;;  %v2804_v2 = vmov (!%p140_p9), 3   ;;  %v2805_v3 = vmov (!%p140_p9), 1   ;;  %v2806_v7 = vmov (!%p140_p9), 2  }
   0xe   : > { %143 = sbr.rel (%p140_p9) target bundleno = 1766 (0x6e6), region = 32  ;;  %2717 = vset.pattern.permute.xlu1 (!%p140_p9), %v2804_v2  ;;  %2716 = vset.pattern.permute.xlu0 (!%p140_p9), %v2805_v3  ;;  %v2807_v9 = vmov (!%p140_p9), 5   ;;  %s2808_s4 = smov (!%p140_p9), 3   ;;  %v2809_v14 = vmov (!%p140_p9), 4   ;;  %v2812_v17 = vmov (!%p140_p9), 6   ;;  %v2813_v18 = vmov (!%p140_p9), 0  }
   0xf   : > { %352 = vperm.xlu1 (!%p140_p9), %2717, %v244_v0   ;;  %311 = vperm.xlu0 (!%p140_p9), %2716, %v244_v0   ;;  %v2898_v4 = vshrl.u32 (!%p140_p9), %v166_v1, 7  ;;  %s2810_s5 = smov (!%p140_p9), 2   ;;  %s2811_s6 = smov (!%p140_p9), 1   ;;  %v245_v19 = vld [vmem:[%s4178_s1 + $0x8] sm:$0x1] (!%p140_p9)  ;;  %v485_v20 = vld [vmem:[%s4178_s1 + $0x10] sm:$0xff] (!%p140_p9) }
  0x10   : > { %s2814_s7 = smov (!%p140_p9), 127   ;;  %s2815_s8 = smov (!%p140_p9), 126   ;;  %v511_v21 = vld [vmem:[%s4178_s1 + $0x18] sm:$0xff] (!%p140_p9)  ;;  %v525_v22 = vld [vmem:[%s4178_s1 + $0x20] sm:$0xff] (!%p140_p9)  ;;  %v526_v23 = vld [vmem:[%s4178_s1 + $0x28] sm:$0xff] (!%p140_p9)  ;;  %v2970_v37 = vand.u32 (!%p140_p9), 127, %v166_v1 }
  0x11   : > { %v253_v5 = vsub.s32 (!%p140_p9), 1, %v2898_v4  ;;  %v2902_v6 = vsub.s32 (!%p140_p9), 0, %v2898_v4  ;;  %v261_v12 = vsub.s32 (!%p140_p9), 3, %v2898_v4  ;;  %v257_v15 = vsub.s32 (!%p140_p9), 2, %v2898_v4  ;;  %s2816_s11 = smov (!%p140_p9), 125  }
  0x12   : > { %v168_v40 = vadd.s32 (!%p140_p9), 128, %v2970_v37  ;;  %v170_v41 = vadd.s32 (!%p140_p9), 384, %v2970_v37  ;;  %v169_v42 = vadd.s32 (!%p140_p9), 256, %v2970_v37  ;;  %vm301_vm0 = vcmp.lt.s32.totalorder (!%p140_p9), %v2970_v37, 2 }
  0x13   : > { %2718 = vset.pattern.permute.xlu1 (!%p140_p9), %v2806_v7  ;;  %2720 = vset.pattern.permute.xlu0 (!%p140_p9), %v2807_v9  ;;  %vm275_vm1 = vcmp.lt.s32.totalorder (!%p140_p9), %v2970_v37, 3  ;;  %vm239_vm3 = vcmp.ge.s32.totalorder (!%p140_p9), %v2970_v37, 2  ;;  %vm235_vm4 = vcmp.ge.s32.totalorder (!%p140_p9), %v2970_v37, 3  ;;  %vm231_vm10 = vcmp.ge.s32.totalorder (!%p140_p9), %v2970_v37, 1 }
  0x14   : > { %340 = vperm.xlu1 (!%p140_p9), %2718, %v244_v0   ;;  %v2979_v45 = vand.u32 (!%p140_p9), 127, %v168_v40  ;;  %v2981_v46 = vand.u32 (!%p140_p9), 127, %v170_v41  ;;  %v2983_v47 = vand.u32 (!%p140_p9), 127, %v169_v42  ;;  %vm330_vm11 = vcmp.lt.s32.totalorder (!%p140_p9), %v2970_v37, 1 }
  0x15   : > { %s163_s26 = scalar_select %p162_p10, %s2863_s16, 1  ;;  %vm219_vm15 = vcmp.lt.s32.totalorder %v2970_v37, 127  ;;  %vm223_vm14 = vcmp.lt.s32.totalorder %v2970_v37, 126 }
  0x16   : > { %vm236_vm2 = vcmp.ge.s32.totalorder %v2979_v45, 3  ;;  %vm4181_vm5 = vcmp.ge.s32.totalorder %v2981_v46, 2  ;;  %vm4184_vm6 = vcmp.ge.s32.totalorder %v2979_v45, 2  ;;  %vm4182_vm7 = vcmp.ge.s32.totalorder %v2983_v47, 2 }
  0x17   : > { %s2424_s27 = sshll.u32 %s163_s26, 2  ;;  %vm237_vm8 = vcmp.ge.s32.totalorder %v2983_v47, 3  ;;  %vm238_vm9 = vcmp.ge.s32.totalorder %v2981_v46, 3  ;;  %vm232_vm12 = vcmp.ge.s32.totalorder %v2979_v45, 1  ;;  %vm4183_vm13 = vcmp.ge.s32.totalorder %v2983_v47, 1 }
  0x18   : > { %s165_s30 = scalar_lea.vmem %s4177_s0, %s2424_s27  ;;  %2719 = vset.pattern.permute.xlu1 %v2809_v14 }
  0x19   : > { %v2908_v8 = vld [vmem:[%s165_s30] sm:$0xf] }
  0x1a   : > { %v254_v10 = vrot.slane %v2908_v8, %v253_v5  ;;  %v250_v11 = vrot.slane %v2908_v8, %v2902_v6  ;;  %v262_v13 = vrot.slane %v2908_v8, %v261_v12  ;;  %v258_v16 = vrot.slane %v2908_v8, %v257_v15 }
  0x1c   : > { %269 = vrot.lane.b32.xlu0 %v254_v10, %s2808_s4  ;;  %267 = vrot.lane.b32.xlu1 %v250_v11, %s2808_s4 }
  0x20   : > { %293 = vrot.lane.b32.xlu0 %v250_v11, %s2810_s5  ;;  %273 = vrot.lane.b32.xlu1 %v262_v13, %s2808_s4 }
  0x24   : > { %299 = vrot.lane.b32.xlu0 %v262_v13, %s2810_s5  ;;  %295 = vrot.lane.b32.xlu1 %v254_v10, %s2810_s5 }
  0x28   : > { %297 = vrot.lane.b32.xlu0 %v258_v16, %s2810_s5  ;;  %271 = vrot.lane.b32.xlu1 %v258_v16, %s2808_s4 }
  0x2c   : > { %322 = vrot.lane.b32.xlu0 %v250_v11, %s2811_s6  ;;  %403 = vperm.xlu1 %2719, %v244_v0  }
  0x30   : > { %328 = vrot.lane.b32.xlu0 %v262_v13, %s2811_s6  ;;  %324 = vrot.lane.b32.xlu1 %v254_v10, %s2811_s6 }
  0x31   : > { %2722 = vset.pattern.permute.xlu1 %v2812_v17 }
  0x34   : > { %432 = vperm.xlu0 %2720, %v244_v0   ;;  %326 = vrot.lane.b32.xlu1 %v258_v16, %s2811_s6 }
  0x38   : > { %2721 = vset.pattern.permute.xlu0 %v2813_v18  ;;  %461 = vperm.xlu1 %2722, %v244_v0  }
  0x39   : > { %286 = vperm.xlu0 %2721, %v244_v0  }
  0x3c   : > { %385 = vrot.lane.b32.xlu1 %v250_v11, %s2814_s7 }
  0x3d   : > { %387 = vrot.lane.b32.xlu0 %v254_v10, %s2814_s7  ;;  %2723 = vset.pattern.permute.xlu1 %v2813_v18 }
  0x40   : > { %389 = vrot.lane.b32.xlu1 %v258_v16, %s2814_s7 }
  0x41   : > { %391 = vrot.lane.b32.xlu0 %v262_v13, %s2814_s7 }
  0x44   : > { %414 = vrot.lane.b32.xlu1 %v250_v11, %s2815_s8 }
  0x45   : > { %416 = vrot.lane.b32.xlu0 %v254_v10, %s2815_s8 }
  0x48   : > { %418 = vrot.lane.b32.xlu1 %v258_v16, %s2815_s8 }
  0x49   : > { %420 = vrot.lane.b32.xlu0 %v262_v13, %s2815_s8 }
  0x4c   : > { %474 = vperm.xlu1 %2723, %v245_v19  }
  0x4d   : > { %443 = vrot.lane.b32.xlu0 %v250_v11, %s2816_s11 }
  0x50   : > { %445 = vrot.lane.b32.xlu1 %v254_v10, %s2816_s11 }
  0x51   : > { %447 = vrot.lane.b32.xlu0 %v258_v16, %s2816_s11 }
  0x54   : > { %449 = vrot.lane.b32.xlu1 %v262_v13, %s2816_s11  ;;  %s2439_s11 = sshll.u32 %s2863_s16, 7  ;;  %s2821_s16 = smov [#allocation2]  }
  0x55   : > { %488 = vperm.xlu0 %2721, %v485_v20   ;;  %s4135_s19 = scalar_lea.hbm %s4180_s3, %s2439_s11  ;;  %s2744_s25 = sshll.u32 %s2821_s16, 4  ;;  %s2745_s25 = int_to_ptr.vmem [resolvable:$false] %s2744_s25 }
  0x56   : > { %s2746_s26 = scalar_lea.vmem %s2745_s25, 256 }
  0x58   : > { %514 = vperm.xlu1 %2723, %v511_v21  }
  0x59   : > { %2724 = vset.pattern.permute.xlu0 %v2805_v3 }
  0x5a   : > { %585 = vperm.xlu0 %2724, %v525_v22  }
  0x5c   : > { %553 = vperm.xlu1 %2723, %v525_v22  }
  0x5e   : > { %2727 = vset.pattern.permute.xlu0 %v2809_v14 }
  0x5f   : > { %669 = vperm.xlu0 %2727, %v525_v22  }
  0x60   : > { %2725 = vset.pattern.permute.xlu1 %v2806_v7 }
  0x61   : > { %597 = vperm.xlu1 %2725, %v525_v22  }
  0x63   : > { %2729 = vset.pattern.permute.xlu0 %v2813_v18 }
  0x65   : > { %2726 = vset.pattern.permute.xlu1 %v2804_v2 }
  0x66   : > { %633 = vperm.xlu1 %2726, %v525_v22  }
  0x6a   : > { %2728 = vset.pattern.permute.xlu1 %v2813_v18 }
  0x6b   : > { %682 = vperm.xlu1 %2728, %v526_v23  }
  0x8e   : > { %v2961_v24 = vpop.permute.xlu1 %352  ;;  %v2963_v25 = vpop.permute.xlu0 %311 }
  0x8f   : > { %v357_v62 = vrot.slane %v2961_v24, %v2902_v6 }
  0x92   : > { %v270_v26 = vpop.permute.xlu0 %269 }
  0x93   : > { %v2965_v27 = vpop.permute.xlu1 %340 }
  0x96   : > { %v294_v28 = vpop.permute.xlu0 %293 }
  0x97   : > { %v268_v29 = vpop.permute.xlu1 %267 }
  0x98   : > { %v278_v55 = vsel %vm275_vm1, %v268_v29, %v270_v26 }
  0x99   : > { %v281_v9 = vsel %vm236_vm2, %v278_v55, 0.0  ;;  %vm221_vm2 = vcmp.lt.s32.totalorder %v2983_v47, 127 }
  0x9a   : > { %v300_v30 = vpop.permute.xlu0 %299 }
  0x9b   : > { %v274_v31 = vpop.permute.xlu1 %273  ;;  %v305_v50 = vsel %vm301_vm0, %v300_v30, %v294_v28 }
  0x9c   : > { %v279_v51 = vsel %vm275_vm1, %v274_v31, %v268_v29  ;;  %v306_v56 = vsel %vm239_vm3, %v305_v50, 0.0 }
  0x9d   : > { %v280_v58 = vsel %vm235_vm4, %v279_v51, 0.0  ;;  %vm220_vm4 = vcmp.lt.s32.totalorder %v2979_v45, 127  ;;  %v314_v10 = vmul.f32 %v2963_v25, %v306_v56 }
  0x9e   : > { %v298_v32 = vpop.permute.xlu0 %297 }
  0x9f   : > { %v296_v33 = vpop.permute.xlu1 %295  ;;  %v302_v57 = vsel %vm301_vm0, %v298_v32, %v300_v30 }
  0xa0   : > { %v304_v52 = vsel %vm301_vm0, %v294_v28, %v296_v33  ;;  %v303_v59 = vsel %vm301_vm0, %v296_v33, %v298_v32  ;;  %v309_v11 = vsel %vm4181_vm5, %v302_v57, 0.0  ;;  %v359_v32 = vmul.f32 %v357_v62, %v2908_v8 }
  0xa1   : > { %v307_v60 = vsel %vm4184_vm6, %v304_v52, 0.0  ;;  %v308_v16 = vsel %vm4182_vm7, %v303_v59, 0.0  ;;  %vm4188_vm5 = vcmp.ge.s32.totalorder %v2981_v46, 1  ;;  %vm225_vm7 = vcmp.lt.s32.totalorder %v2983_v47, 126 }
  0xa2   : > { %v323_v34 = vpop.permute.xlu0 %322  ;;  %v315_v17 = vmul.f32 %v2963_v25, %v307_v60  ;;  %v316_v33 = vmul.f32 %v2963_v25, %v308_v16  ;;  %v364_v55 = vrot.slane %v359_v32, %v2902_v6  ;;  %vm229_vm6 = vcmp.lt.s32.totalorder %v2983_v47, 125 }
  0xa3   : > { %v272_v35 = vpop.permute.xlu1 %271 }
  0xa4   : > { %v277_v61 = vsel %vm275_vm1, %v270_v26, %v272_v35  ;;  %v276_v63 = vsel %vm275_vm1, %v272_v35, %v274_v31  ;;  %vm222_vm1 = vcmp.lt.s32.totalorder %v2981_v46, 127  ;;  %v317_v35 = vmul.f32 %v2963_v25, %v309_v11 }
  0xa5   : > { %v282_v19 = vsel %vm237_vm8, %v277_v61, 0.0  ;;  %v283_v21 = vsel %vm238_vm9, %v276_v63, 0.0  ;;  %vm226_vm8 = vcmp.lt.s32.totalorder %v2981_v46, 126  ;;  %vm4185_vm9 = vcmp.lt.s32.totalorder %v2979_v45, 126 }
  0xa6   : > { %v2972_v38 = vpop.permute.xlu0 %328 }
  0xa7   : > { %v334_v0 = vsel %vm330_vm11, %v2972_v38, %v323_v34 }
  0xa8   : > { %v335_v22 = vsel %vm231_vm10, %v334_v0, 0.0 }
  0xab   : > { %v2967_v36 = vpop.permute.xlu1 %403 }
  0xaf   : > { %v325_v39 = vpop.permute.xlu1 %324 }
  0xb0   : > { %v333_v13 = vsel %vm330_vm11, %v323_v34, %v325_v39 }
  0xb1   : > { %v336_v26 = vsel %vm232_vm12, %v333_v13, 0.0 }
  0xb2   : > { %v344_v41 = vmul.f32 %v2965_v27, %v336_v26 }
  0xb3   : > { %v2977_v43 = vpop.permute.xlu0 %432  ;;  %v327_v44 = vpop.permute.xlu1 %326 }
  0xb4   : > { %v332_v23 = vsel %vm330_vm11, %v325_v39, %v327_v44  ;;  %v331_v28 = vsel %vm330_vm11, %v327_v44, %v2972_v38  ;;  %v343_v39 = vmul.f32 %v2965_v27, %v335_v22 }
  0xb5   : > { %v337_v40 = vsel %vm4183_vm13, %v332_v23, 0.0  ;;  %v338_v8 = vsel %vm4188_vm5, %v331_v28, 0.0  ;;  %vm227_vm5 = vcmp.lt.s32.totalorder %v2970_v37, 125  ;;  %vm228_vm13 = vcmp.lt.s32.totalorder %v2979_v45, 125 }
  0xb6   : > { %v345_v52 = vmul.f32 %v2965_v27, %v337_v40  ;;  %v346_v57 = vmul.f32 %v2965_v27, %v338_v8 }
  0xb7   : > { %v2987_v49 = vpop.permute.xlu1 %461 }
  0xb8   : > { %v287_v48 = vpop.permute.xlu0 %286 }
  0xb9   : > { %v289_v1 = vmul.f32 %v287_v48, %v280_v58  ;;  %v290_v20 = vmul.f32 %v287_v48, %v281_v9  ;;  %v291_v24 = vmul.f32 %v287_v48, %v282_v19  ;;  %v292_v29 = vmul.f32 %v287_v48, %v283_v21 }
  0xba   : > { %v368_v9 = vrot.slane %v359_v32, %v253_v5  ;;  %v372_v21 = vrot.slane %v359_v32, %v257_v15 }
  0xbb   : > { %v3008_v54 = vpop.permute.xlu1 %385  ;;  %v318_v30 = vadd.f32 %v314_v10, %v289_v1  ;;  %v319_v38 = vadd.f32 %v315_v17, %v290_v20  ;;  %v320_v42 = vadd.f32 %v316_v33, %v291_v24  ;;  %v321_v44 = vadd.f32 %v317_v35, %v292_v29 }
  0xbc   : > { %v388_v53 = vpop.permute.xlu0 %387  ;;  %v376_v20 = vrot.slane %v359_v32, %v261_v12 }
  0xbd   : > { %v347_v48 = vadd.f32 %v343_v39, %v318_v30  ;;  %v396_v25 = vsel %vm219_vm15, %v3008_v54, %v388_v53  ;;  %v348_v58 = vadd.f32 %v344_v41, %v319_v38  ;;  %v350_v0 = vadd.f32 %v346_v57, %v321_v44 }
  0xbe   : > { %v349_v1 = vadd.f32 %v345_v52, %v320_v42 }
  0xbf   : > { %v390_v14 = vpop.permute.xlu1 %389  ;;  %v381_v63 = vadd.f32 %v364_v55, %v347_v48  ;;  %v382_v22 = vadd.f32 %v368_v9, %v348_v58  ;;  %v384_v30 = vadd.f32 %v376_v20, %v350_v0 }
  0xc0   : > { %v392_v2 = vpop.permute.xlu0 %391  ;;  %v395_v50 = vsel %vm219_vm15, %v388_v53, %v390_v14  ;;  %v398_v53 = vsel %vm219_vm15, %v396_v25, 0.0 }
  0xc1   : > { %v397_v61 = vsel %vm219_vm15, %v392_v2, %v3008_v54  ;;  %v394_v62 = vsel %vm219_vm15, %v390_v14, %v392_v2  ;;  %v399_v27 = vsel %vm220_vm4, %v395_v50, 0.0  ;;  %v406_v16 = vmul.f32 %v2967_v36, %v398_v53 }
  0xc2   : > { %v401_v5 = vsel %vm222_vm1, %v397_v61, 0.0  ;;  %v400_v17 = vsel %vm221_vm2, %v394_v62, 0.0  ;;  %v407_v19 = vmul.f32 %v2967_v36, %v399_v27 }
  0xc3   : > { %v415_v34 = vpop.permute.xlu1 %414  ;;  %v409_v12 = vmul.f32 %v2967_v36, %v401_v5  ;;  %v408_v15 = vmul.f32 %v2967_v36, %v400_v17  ;;  %v410_v33 = vadd.f32 %v406_v16, %v381_v63 }
  0xc4   : > { %v417_v31 = vpop.permute.xlu0 %416 }
  0xc5   : > { %v425_v59 = vsel %vm223_vm14, %v415_v34, %v417_v31  ;;  %v413_v25 = vadd.f32 %v409_v12, %v384_v30 }
  0xc6   : > { %v427_v11 = vsel %vm223_vm14, %v425_v59, 0.0 }
  0xc7   : > { %v419_v56 = vpop.permute.xlu1 %418  ;;  %v435_v23 = vmul.f32 %v2977_v43, %v427_v11 }
  0xc8   : > { %v421_v51 = vpop.permute.xlu0 %420  ;;  %v424_v60 = vsel %vm223_vm14, %v417_v31, %v419_v56  ;;  %v383_v31 = vadd.f32 %v372_v21, %v349_v1 }
  0xc9   : > { %v426_v54 = vsel %vm223_vm14, %v421_v51, %v415_v34  ;;  %v423_v2 = vsel %vm223_vm14, %v419_v56, %v421_v51  ;;  %v428_v13 = vsel %vm4185_vm9, %v424_v60, 0.0  ;;  %vm230_vm9 = vcmp.lt.s32.totalorder %v2981_v46, 125 }
  0xca   : > { %v430_v24 = vsel %vm226_vm8, %v426_v54, 0.0  ;;  %v429_v26 = vsel %vm225_vm7, %v423_v2, 0.0  ;;  %v436_v28 = vmul.f32 %v2977_v43, %v428_v13  ;;  %v411_v34 = vadd.f32 %v407_v19, %v382_v22 }
  0xcb   : > { %v475_v14 = vpop.permute.xlu1 %474  ;;  %v438_v40 = vmul.f32 %v2977_v43, %v430_v24  ;;  %v437_v38 = vmul.f32 %v2977_v43, %v429_v26  ;;  %v439_v36 = vadd.f32 %v435_v23, %v410_v33  ;;  %v412_v50 = vadd.f32 %v408_v15, %v383_v31  ;;  %v695_v15 = vld [vmem:[%s4178_s1 + $0x40] sm:$0xff]  ;;  %v877_v33 = vld [vmem:[%s4178_s1 + $0x58] sm:$0xff] }
  0xcc   : > { %v444_v10 = vpop.permute.xlu0 %443  ;;  %v440_v42 = vadd.f32 %v436_v28, %v411_v34  ;;  %v2817_v31 = vmov 0.0   ;;  %v696_v34 = vld [vmem:[%s4178_s1 + $0x48] sm:$0xff] }
  0xcd   : > { %v442_v57 = vadd.f32 %v438_v40, %v413_v25  ;;  %v441_v58 = vadd.f32 %v437_v38, %v412_v50  ;;  %778 = vmatprep.mubr.f32.mxu1 %v2817_v31  ;;  %1141 = vmatprep.mubr.f32.mxu0 %v2817_v31 }
  0xcf   : > { %v446_v32 = vpop.permute.xlu1 %445 }
  0xd0   : > { %v448_v29 = vpop.permute.xlu0 %447  ;;  %v454_v39 = vsel %vm227_vm5, %v444_v10, %v446_v32 }
  0xd1   : > { %v453_v35 = vsel %vm227_vm5, %v446_v32, %v448_v29  ;;  %v456_v41 = vsel %vm227_vm5, %v454_v39, 0.0  ;;  %v876_v32 = vld [vmem:[%s4178_s1 + $0x50] sm:$0xff]  ;;  %v878_v39 = vld [vmem:[%s4178_s1 + $0x60] sm:$0xff] }
  0xd2   : > { %v457_v8 = vsel %vm228_vm13, %v453_v35, 0.0  ;;  %v464_v44 = vmul.f32 %v2987_v49, %v456_v41  ;;  %v879_v35 = vld [vmem:[%s4178_s1 + $0x68] sm:$0xff]  ;;  %vm4191_vm13 = vcmp.ge.s32.totalorder %v2983_v47, 1 }
  0xd3   : > { %v465_v48 = vmul.f32 %v2987_v49, %v457_v8  ;;  %v450_v51 = vpop.permute.xlu1 %449 }
  0xd4   : > { %v468_v52 = vadd.f32 %v464_v44, %v439_v36  ;;  %v452_v43 = vsel %vm227_vm5, %v448_v29, %v450_v51  ;;  %v455_v56 = vsel %vm227_vm5, %v450_v51, %v444_v10  ;;  %v489_v2 = vpop.permute.xlu0 %488  ;;  %vm4193_vm5 = vcmp.ge.s32.totalorder %v2983_v47, 2 }
  0xd5   : > { %v469_v55 = vadd.f32 %v465_v48, %v440_v42  ;;  %v458_v59 = vsel %vm229_vm6, %v452_v43, 0.0  ;;  %v459_v60 = vsel %vm230_vm9, %v455_v56, 0.0  ;;  %vm4189_vm6 = vcmp.ge.s32.totalorder %v2979_v45, 2 }
  0xd6   : > { %v477_v53 = vadd.f32 %v475_v14, %v468_v52  ;;  %v466_v62 = vmul.f32 %v2987_v49, %v458_v59  ;;  %v467_v27 = vmul.f32 %v2987_v49, %v459_v60  ;;  %vm4192_vm9 = vcmp.ge.s32.totalorder %v2981_v46, 1 }
  0xd7   : > { %v478_v61 = vadd.f32 %v475_v14, %v469_v55  ;;  %v515_v19 = vpop.permute.xlu1 %514 }
  0xd8   : > { %v481_v63 = vmax.f32 %v477_v53, 0.0  ;;  %v470_v1 = vadd.f32 %v466_v62, %v441_v58  ;;  %v471_v9 = vadd.f32 %v467_v27, %v442_v57 }
  0xd9   : > { %v482_v0 = vmax.f32 %v478_v61, 0.0  ;;  %v586_v38 = vpop.permute.xlu0 %585 }
  0xda   : > { %v494_v10 = vrot.slane %v481_v63, %v2902_v6  ;;  %v480_v54 = vadd.f32 %v475_v14, %v471_v9  ;;  %v479_v5 = vadd.f32 %v475_v14, %v470_v1 }
  0xdb   : > { %v498_v11 = vrot.slane %v482_v0, %v2902_v6 }
  0xdc   : > { %v507_v13 = vmul.f32 %v494_v10, %v489_v2  ;;  %v484_v17 = vmax.f32 %v480_v54, 0.0  ;;  %v483_v49 = vmax.f32 %v479_v5, 0.0 }
  0xdd   : > { %v508_v16 = vmul.f32 %v498_v11, %v489_v2 }
  0xde   : > { %v506_v20 = vrot.slane %v484_v17, %v2902_v6  ;;  %v517_v21 = vadd.f32 %v515_v19, %v507_v13  ;;  %v502_v14 = vrot.slane %v483_v49, %v2902_v6  ;;  %v3222_v41 = vpop.permute.xlu0 %669 }
  0xdf   : > { %v518_v22 = vadd.f32 %v515_v19, %v508_v16 }
  0xe0   : > { %v510_v23 = vmul.f32 %v506_v20, %v489_v2  ;;  %v3149_v24 = vmax.f32 %v517_v21, 0.0  ;;  %v509_v29 = vmul.f32 %v502_v14, %v489_v2 }
  0xe1   : > { %v3151_v26 = vmax.f32 %v518_v22, 0.0 }
  0xe2   : > { %527 = vrot.lane.b32.xlu0 %v3149_v24, %s2810_s5  ;;  %v520_v28 = vadd.f32 %v515_v19, %v510_v23  ;;  %v519_v12 = vadd.f32 %v515_v19, %v509_v29 }
  0xe3   : > { %529 = vrot.lane.b32.xlu1 %v3151_v26, %s2810_s5 }
  0xe4   : > { %v3162_v30 = vmax.f32 %v520_v28, 0.0  ;;  %v3172_v6 = vmax.f32 %v519_v12, 0.0 }
  0xe6   : > { %560 = vrot.lane.b32.xlu0 %v3149_v24, %s2811_s6 }
  0xe7   : > { %562 = vrot.lane.b32.xlu1 %v3151_v26, %s2811_s6 }
  0xea   : > { %533 = vrot.lane.b32.xlu0 %v3162_v30, %s2810_s5 }
  0xeb   : > { %566 = vrot.lane.b32.xlu1 %v3162_v30, %s2811_s6 }
  0xee   : > { %608 = vrot.lane.b32.xlu0 %v3149_v24, %s2814_s7 }
  0xef   : > { %610 = vrot.lane.b32.xlu1 %v3151_v26, %s2814_s7 }
  0xf2   : > { %646 = vrot.lane.b32.xlu0 %v3151_v26, %s2815_s8 }
  0xf3   : > { %612 = vrot.lane.b32.xlu1 %v3172_v6, %s2814_s7 }
  0xf6   : > { %644 = vrot.lane.b32.xlu0 %v3149_v24, %s2815_s8 }
  0xf7   : > { %648 = vrot.lane.b32.xlu1 %v3172_v6, %s2815_s8 }
  0xfa   : > { %564 = vrot.lane.b32.xlu0 %v3172_v6, %s2811_s6 }
  0xfb   : > { %531 = vrot.lane.b32.xlu1 %v3172_v6, %s2810_s5  ;;  %s159_s5 = sand.u32 1, %s2794_s13  }
  0xfc   : > { %s2423_s10 = sshll.u32 %s159_s5, 3  ;;  %s2347_s20 = scalar_lea.sflag [#allocation3], %s159_s5 }
  0xfd   : > { %s161_s17 = scalar_lea.vmem [#allocation2], %s2423_s10 }
  0xfe   : > { %650 = vrot.lane.b32.xlu0 %v3162_v30, %s2815_s8 }
  0xff   : > { %614 = vrot.lane.b32.xlu1 %v3162_v30, %s2814_s7 }
 0x102   : > { %704 = vperm.xlu0 %2729, %v696_v34  }
 0x103   : > { %699 = vperm.xlu1 %2728, %v695_v15  }
 0x106   : > { %2730 = vset.pattern.permute.xlu0 %v2805_v3 }
 0x107   : > { %914 = vperm.xlu1 %2728, %v876_v32   ;;  %931 = vperm.xlu0 %2730, %v876_v32  }
 0x10b   : > { %919 = vperm.xlu1 %2728, %v877_v33   ;;  %2733 = vset.pattern.permute.xlu0 %v2806_v7 }
 0x10c   : > { %991 = vperm.xlu0 %2733, %v877_v33  }
 0x10f   : > { %2731 = vset.pattern.permute.xlu1 %v2805_v3  ;;  %v3216_v3 = vpop.permute.xlu1 %553 }
 0x110   : > { %935 = vperm.xlu1 %2731, %v877_v33   ;;  %2734 = vset.pattern.permute.xlu0 %v2813_v18 }
 0x111   : > { %1012 = vperm.xlu0 %2734, %v878_v39  }
 0x113   : > { %v3218_v40 = vpop.permute.xlu1 %597 }
 0x114   : > { %2732 = vset.pattern.permute.xlu1 %v2806_v7  ;;  %v600_v54 = vmul.f32 %v3218_v40, %v3149_v24  ;;  %v601_v20 = vmul.f32 %v3218_v40, %v3151_v26 }
 0x115   : > { %987 = vperm.xlu1 %2732, %v876_v32  }
 0x117   : > { %v3220_v7 = vpop.permute.xlu1 %633 }
 0x119   : > { %2735 = vset.pattern.permute.xlu1 %v2813_v18 }
 0x11a   : > { %1017 = vperm.xlu1 %2735, %v879_v35  }
 0x11b   : > { %v3224_v8 = vpop.permute.xlu1 %682 }
 0x154   : > { %v528_v36 = vpop.permute.xlu0 %527 }
 0x155   : > { %v530_v42 = vpop.permute.xlu1 %529 }
 0x156   : > { %v537_v55 = vsel %vm301_vm0, %v528_v36, %v530_v42 }
 0x157   : > { %v548_v61 = vsel %vm4189_vm6, %v537_v55, 0.0  ;;  %vm4194_vm6 = vcmp.ge.s32.totalorder %v2981_v46, 2  ;;  %v603_v55 = vmul.f32 %v3218_v40, %v3162_v30  ;;  %v1287_v46 = vld [vmem:[%s4179_s2 + $0x80] sm:$0xff] }
 0x158   : > { %v561_v44 = vpop.permute.xlu0 %560  ;;  %v557_v63 = vmul.f32 %v3216_v3, %v548_v61 }
 0x159   : > { %v563_v48 = vpop.permute.xlu1 %562 }
 0x15a   : > { %v570_v18 = vsel %vm330_vm11, %v561_v44, %v563_v48 }
 0x15b   : > { %v581_v57 = vsel %vm232_vm12, %v570_v18, 0.0 }
 0x15c   : > { %v534_v25 = vpop.permute.xlu0 %533  ;;  %v589_v62 = vmul.f32 %v586_v38, %v581_v57 }
 0x15d   : > { %v567_v50 = vpop.permute.xlu1 %566  ;;  %v538_v51 = vsel %vm301_vm0, %v534_v25, %v528_v36 }
 0x15e   : > { %v571_v52 = vsel %vm330_vm11, %v567_v50, %v561_v44  ;;  %v547_v43 = vsel %vm239_vm3, %v538_v51, 0.0  ;;  %v593_v2 = vadd.f32 %v589_v62, %v557_v63  ;;  %vm4190_vm3 = vcmp.lt.s32.totalorder %v2979_v45, 126 }
 0x15f   : > { %v580_v56 = vsel %vm231_vm10, %v571_v52, 0.0  ;;  %v556_v58 = vmul.f32 %v3216_v3, %v547_v43 }
 0x160   : > { %v588_v59 = vmul.f32 %v586_v38, %v580_v56  ;;  %v609_v60 = vpop.permute.xlu0 %608  ;;  %v605_v14 = vadd.f32 %v601_v20, %v593_v2 }
 0x161   : > { %v611_v53 = vpop.permute.xlu1 %610 }
 0x162   : > { %v618_v27 = vsel %vm219_vm15, %v609_v60, %v611_v53  ;;  %v592_v0 = vadd.f32 %v588_v59, %v556_v58 }
 0x163   : > { %v628_v10 = vsel %vm219_vm15, %v618_v27, 0.0 }
 0x164   : > { %v647_v1 = vpop.permute.xlu0 %646  ;;  %v636_v16 = vmul.f32 %v3220_v7, %v628_v10  ;;  %v604_v21 = vadd.f32 %v600_v54, %v592_v0 }
 0x165   : > { %v613_v9 = vpop.permute.xlu1 %612 }
 0x166   : > { %v617_v11 = vsel %vm219_vm15, %v611_v53, %v613_v9  ;;  %v640_v32 = vadd.f32 %v636_v16, %v604_v21 }
 0x167   : > { %v629_v13 = vsel %vm220_vm4, %v617_v11, 0.0 }
 0x168   : > { %v637_v5 = vmul.f32 %v3220_v7, %v629_v13  ;;  %v645_v17 = vpop.permute.xlu0 %644 }
 0x169   : > { %v649_v19 = vpop.permute.xlu1 %648  ;;  %v654_v22 = vsel %vm223_vm14, %v645_v17, %v647_v1 }
 0x16a   : > { %v653_v49 = vsel %vm223_vm14, %v647_v1, %v649_v19  ;;  %v664_v23 = vsel %vm223_vm14, %v654_v22, 0.0  ;;  %v641_v15 = vadd.f32 %v637_v5, %v605_v14 }
 0x16b   : > { %v665_v24 = vsel %vm4190_vm3, %v653_v49, 0.0  ;;  %v672_v28 = vmul.f32 %v3222_v41, %v664_v23  ;;  %vm2004_vm3 = vcmask 1044484  }
 0x16c   : > { %v565_v29 = vpop.permute.xlu0 %564  ;;  %v673_v26 = vmul.f32 %v3222_v41, %v665_v24 }
 0x16d   : > { %v532_v12 = vpop.permute.xlu1 %531  ;;  %v568_v33 = vsel %vm330_vm11, %v565_v29, %v567_v50  ;;  %v569_v34 = vsel %vm330_vm11, %v563_v48, %v565_v29  ;;  %v676_v58 = vadd.f32 %v672_v28, %v640_v32 }
 0x16e   : > { %v535_v35 = vsel %vm301_vm0, %v532_v12, %v534_v25  ;;  %v536_v39 = vsel %vm301_vm0, %v530_v42, %v532_v12  ;;  %v582_v36 = vsel %vm4191_vm13, %v569_v34, 0.0  ;;  %v583_v44 = vsel %vm4192_vm9, %v568_v33, 0.0 }
 0x16f   : > { %v549_v18 = vsel %vm4193_vm5, %v536_v39, 0.0  ;;  %v550_v50 = vsel %vm4194_vm6, %v535_v35, 0.0  ;;  %v590_v51 = vmul.f32 %v586_v38, %v582_v36  ;;  %v591_v48 = vmul.f32 %v586_v38, %v583_v44 }
 0x170   : > { %v558_v52 = vmul.f32 %v3216_v3, %v549_v18  ;;  %v559_v25 = vmul.f32 %v3216_v3, %v550_v50  ;;  %v602_v42 = vmul.f32 %v3218_v40, %v3172_v6  ;;  %v651_v43 = vpop.permute.xlu0 %650  ;;  %v677_v57 = vadd.f32 %v673_v26, %v641_v15 }
 0x171   : > { %v615_v56 = vpop.permute.xlu1 %614  ;;  %v652_v61 = vsel %vm223_vm14, %v649_v19, %v651_v43  ;;  %v655_v38 = vsel %vm223_vm14, %v651_v43, %v645_v17  ;;  %vm707_vm0 = vcmask 64512   ;;  %v693_v17 = vld [vmem:[%s4178_s1 + $0x30] sm:$0xff]  ;;  %vm4197_vm14 = vmmov %vm4192_vm9  ;;  %vm2013_vm5 = vcmask 1047559  }
 0x172   : > { %v594_v59 = vadd.f32 %v590_v51, %v558_v52  ;;  %v595_v53 = vadd.f32 %v591_v48, %v559_v25  ;;  %v616_v3 = vsel %vm219_vm15, %v613_v9, %v615_v56  ;;  %v619_v6 = vsel %vm219_vm15, %v615_v56, %v609_v60 }
 0x173   : > { %v666_v30 = vsel %vm225_vm7, %v652_v61, 0.0  ;;  %v667_v40 = vsel %vm226_vm8, %v655_v38, 0.0  ;;  %v630_v63 = vsel %vm221_vm2, %v616_v3, 0.0  ;;  %v631_v0 = vsel %vm222_vm1, %v619_v6, 0.0  ;;  %vm4195_vm7 = vmmov %vm4191_vm13 }
 0x174   : > { %v606_v62 = vadd.f32 %v602_v42, %v594_v59  ;;  %v607_v27 = vadd.f32 %v603_v55, %v595_v53  ;;  %v686_v1 = vadd.f32 %v3224_v8, %v677_v57  ;;  %v685_v9 = vadd.f32 %v3224_v8, %v676_v58  ;;  %v1041_v57 = vld [vmem:[%s4178_s1 + $0x98] sm:$0xff]  ;;  %v1043_v58 = vld [vmem:[%s4178_s1 + $0xa8] sm:$0xff]  ;;  %v1040_v59 = vld [vmem:[%s4178_s1 + $0x90] sm:$0xff] }
 0x175   : > { %v638_v60 = vmul.f32 %v3220_v7, %v630_v63  ;;  %v639_v10 = vmul.f32 %v3220_v7, %v631_v0  ;;  %v674_v2 = vmul.f32 %v3222_v41, %v666_v30  ;;  %v675_v13 = vmul.f32 %v3222_v41, %v667_v40  ;;  %v694_v7 = vld [vmem:[%s4178_s1 + $0x38] sm:$0xff]  ;;  %v1042_v53 = vld [vmem:[%s4178_s1 + $0xa0] sm:$0xff] }
 0x176   : > { %v690_v11 = vmax.f32 %v686_v1, 0.0  ;;  %v689_v54 = vmax.f32 %v685_v9, 0.0  ;;  %vm2820_vm8 = vmmov 0   ;;  %vm2007_vm13 = vcmask 1045509  }
 0x177   : > { %v642_v16 = vadd.f32 %v638_v60, %v606_v62  ;;  %v643_v5 = vadd.f32 %v639_v10, %v607_v27  ;;  %vm2247_vm6 = vcmask 785408  }
 0x178   : > { %714 = vmatprep.subr.mxu1 %v690_v11 }
 0x179   : > { %v678_v19 = vadd.f32 %v674_v2, %v642_v16  ;;  %715 = vmatpush1.msra.mxu1 %v689_v54  ;;  %v679_v20 = vadd.f32 %v675_v13, %v643_v5 }
 0x17a   : > { %2425 = vmatmul.mubr.msk.f32.vlgmr.msra.gmra.mrb[0].mxu1 %vm707_vm0, %v693_v17 }
 0x17b   : > { %784 = vmatprep.mubr.f32.mxu1 %v2817_v31  ;;  %v688_v41 = vadd.f32 %v3224_v8, %v679_v20  ;;  %v687_v21 = vadd.f32 %v3224_v8, %v678_v19 }
 0x17d   : > { %v692_v22 = vmax.f32 %v688_v41, 0.0  ;;  %v691_v49 = vmax.f32 %v687_v21, 0.0 }
 0x17e   : > { %2426 = vmatmul.mubr.msk.f32.gmra.mrb[2].mxu1 %vm707_vm0, %v694_v7 }
 0x17f   : > { %791 = vmatprep.subr.mxu1 %v692_v22  ;;  %855 = vmatprep.mubr.f32.mxu1 %v2817_v31 }
 0x180   : > { %792 = vmatpush1.msra.mxu1 %v691_v49 }
 0x181   : > { %v705_v12 = vpop.permute.xlu0 %704 }
 0x182   : > { %2427 = vmatmul.mubr.msk.f32.vlgmr.msra.gmra.mrb[4].mxu1 %vm707_vm0, %v693_v17  ;;  %v700_v23 = vpop.permute.xlu1 %699 }
 0x183   : > { %861 = vmatprep.mubr.f32.mxu1 %v2817_v31 }
 0x186   : > { %2428 = vmatmul.mubr.msk.f32.gmra.mrb[6].mxu1 %vm707_vm0, %v694_v7  ;;  %v3368_v61 = vpop.permute.xlu1 %914  ;;  %v3372_v6 = vpop.permute.xlu0 %931  ;;  %vm2321_vm0 = vcmask 3072  }
 0x187   : > { %1230 = vmatprep.mubr.f32.mxu1 %v2817_v31 }
 0x18a   : > { %v3370_v38 = vpop.permute.xlu1 %919 }
 0x18b   : > { %v3376_v40 = vpop.permute.xlu0 %991 }
 0x18f   : > { %v936_v3 = vpop.permute.xlu1 %935 }
 0x190   : > { %v3380_v27 = vpop.permute.xlu0 %1012 }
 0x194   : > { %v3374_v30 = vpop.permute.xlu1 %987 }
 0x199   : > { %v3378_v62 = vpop.permute.xlu1 %1017 }
 0x24d   : > { %v780_v24 = vpop.f32.mrb[0].mxu1 }
 0x24e   : > { %v781_v14 = vadd.f32 %v780_v24, %v700_v23  ;;  %v782_v8 = vpop.f32.mrb[1].mxu1 }
 0x24f   : > { %v783_v28 = vadd.f32 %v782_v8, %v700_v23 }
 0x250   : > { %v3328_v29 = vmax.f32 %v781_v14, 0.0 }
 0x251   : > { %v3330_v15 = vmax.f32 %v783_v28, 0.0  ;;  %v786_v26 = vpop.f32.mrb[2].mxu1 }
 0x252   : > { %v787_v32 = vadd.f32 %v786_v26, %v705_v12  ;;  %880 = vrot.lane.b32.xlu1 %v3328_v29, %s2811_s6  ;;  %v788_v33 = vpop.f32.mrb[3].mxu1  ;;  %v938_v7 = vmul.f32 %v3372_v6, %v3328_v29 }
 0x253   : > { %884 = vrot.lane.b32.xlu0 %v3330_v15, %s2811_s6  ;;  %v789_v34 = vadd.f32 %v788_v33, %v705_v12  ;;  %v939_v41 = vmul.f32 %v3372_v6, %v3330_v15 }
 0x254   : > { %v872_v35 = vmax.f32 %v787_v32, 0.0 }
 0x255   : > { %v857_v39 = vpop.f32.mrb[4].mxu1  ;;  %v873_v44 = vmax.f32 %v789_v34, 0.0 }
 0x256   : > { %954 = vrot.lane.b32.xlu1 %v3328_v29, %s2814_s7  ;;  %v859_v36 = vpop.f32.mrb[5].mxu1  ;;  %v858_v18 = vadd.f32 %v857_v39, %v700_v23  ;;  %v942_v22 = vmul.f32 %v936_v3, %v872_v35 }
 0x257   : > { %956 = vrot.lane.b32.xlu0 %v872_v35, %s2814_s7  ;;  %v860_v52 = vadd.f32 %v859_v36, %v700_v23  ;;  %v943_v49 = vmul.f32 %v936_v3, %v873_v44 }
 0x258   : > { %v870_v48 = vmax.f32 %v858_v18, 0.0 }
 0x259   : > { %v863_v50 = vpop.f32.mrb[6].mxu1  ;;  %v3344_v25 = vmax.f32 %v860_v52, 0.0 }
 0x25a   : > { %958 = vrot.lane.b32.xlu1 %v3330_v15, %s2814_s7  ;;  %v865_v51 = vpop.f32.mrb[7].mxu1  ;;  %v864_v42 = vadd.f32 %v863_v50, %v705_v12  ;;  %v940_v8 = vmul.f32 %v3372_v6, %v870_v48 }
 0x25b   : > { %960 = vrot.lane.b32.xlu0 %v873_v44, %s2814_s7  ;;  %v866_v43 = vadd.f32 %v865_v51, %v705_v12 }
 0x25c   : > { %v874_v55 = vmax.f32 %v864_v42, 0.0 }
 0x25d   : > { %v875_v56 = vmax.f32 %v866_v43, 0.0 }
 0x25e   : > { %882 = vrot.lane.b32.xlu1 %v872_v35, %s2811_s6  ;;  %v944_v28 = vmul.f32 %v936_v3, %v874_v55 }
 0x25f   : > { %888 = vrot.lane.b32.xlu0 %v870_v48, %s2811_s6  ;;  %v945_v26 = vmul.f32 %v936_v3, %v875_v56 }
 0x262   : > { %886 = vrot.lane.b32.xlu1 %v873_v44, %s2811_s6 }
 0x263   : > { %892 = vrot.lane.b32.xlu0 %v3344_v25, %s2811_s6 }
 0x266   : > { %962 = vrot.lane.b32.xlu1 %v870_v48, %s2814_s7 }
 0x267   : > { %964 = vrot.lane.b32.xlu0 %v874_v55, %s2814_s7 }
 0x26a   : > { %890 = vrot.lane.b32.xlu1 %v874_v55, %s2811_s6 }
 0x26b   : > { %968 = vrot.lane.b32.xlu0 %v875_v56, %s2814_s7 }
 0x26e   : > { %894 = vrot.lane.b32.xlu1 %v875_v56, %s2811_s6  ;;  %s2360_s6 = sshll.u32 %s161_s17, 4  ;;  %s4137_s6 = int_to_ptr.vmem [resolvable:$true] %s2360_s6 }
 0x26f   : > { %1051 = vperm.xlu0 %2734, %v1041_v57   ;;  %s2740_s24 = scalar_lea.vmem %s4137_s6, 128  ;;  %p2747_p0 = scmp.lt.s32.totalorder %s4137_s6, %s2745_s25 }
 0x270   : > { %p2741_p11 = scmp.ne.s32.totalorder %s4137_s6, %s2740_s24  ;;  %p2748_p1 = scmp.lt.s32.totalorder %s2746_s26, %s2740_s24 }
 0x272   : > { %966 = vrot.lane.b32.xlu1 %v3344_v25, %s2814_s7  ;;  %p2742_p12 = pnand %p2741_p11, %p2880_p5  ;;  %p2749_p2 = por %p2748_p1, %p2747_p0 }
 0x273   : > { %1061 = vperm.xlu0 %2734, %v1043_v58  }
 0x274   : > { %p2743_p13 = pneg %p2742_p12 }
 0x276   : > { %1046 = vperm.xlu1 %2735, %v1040_v59   ;;  %p2750_p3 = pnand %p2749_p2, %p2743_p13 }
 0x27a   : > { %1056 = vperm.xlu1 %2735, %v1042_v53  }
 0x2c4   : > { %v881_v63 = vpop.permute.xlu1 %880 }
 0x2c5   : > { %v885_v0 = vpop.permute.xlu0 %884 }
 0x2c6   : > { %v900_v54 = vsel %vm330_vm11, %v881_v63, %v885_v0 }
 0x2c7   : > { %v905_v13 = vsel %vm232_vm12, %v900_v54, 0.0 }
 0x2c8   : > { %v3382_v1 = vpop.permute.xlu1 %954  ;;  %v923_v21 = vmul.f32 %v3368_v61, %v905_v13 }
 0x2c9   : > { %v957_v9 = vpop.permute.xlu0 %956 }
 0x2ca   : > { %v947_v35 = vadd.f32 %v939_v41, %v923_v21 }
 0x2cc   : > { %v959_v60 = vpop.permute.xlu1 %958 }
 0x2cd   : > { %v961_v10 = vpop.permute.xlu0 %960  ;;  %v974_v23 = vsel %vm219_vm15, %v3382_v1, %v959_v60 }
 0x2ce   : > { %v978_v39 = vsel %vm219_vm15, %v974_v23, 0.0  ;;  %v975_v42 = vsel %vm219_vm15, %v957_v9, %v961_v10 }
 0x2d0   : > { %v883_v11 = vpop.permute.xlu1 %882 }
 0x2d1   : > { %v889_v2 = vpop.permute.xlu0 %888 }
 0x2d2   : > { %v898_v32 = vsel %vm330_vm11, %v885_v0, %v889_v2 }
 0x2d3   : > { %v906_v55 = vsel %vm4195_vm7, %v898_v32, 0.0 }
 0x2d4   : > { %v887_v16 = vpop.permute.xlu1 %886  ;;  %v924_v23 = vmul.f32 %v3368_v61, %v906_v55 }
 0x2d5   : > { %v901_v5 = vsel %vm330_vm11, %v883_v11, %v887_v16  ;;  %v893_v17 = vpop.permute.xlu0 %892 }
 0x2d6   : > { %v909_v19 = vsel %vm232_vm12, %v901_v5, 0.0  ;;  %v902_v20 = vsel %vm330_vm11, %v893_v17, %v881_v63  ;;  %v896_v50 = vsel %vm330_vm11, %v889_v2, %v893_v17  ;;  %vm4196_vm12 = vmmov %vm4195_vm7  ;;  %vm2341_vm7 = vcmask 1043456  }
 0x2d7   : > { %v927_v24 = vmul.f32 %v3370_v38, %v909_v19  ;;  %v904_v29 = vsel %vm231_vm10, %v902_v20, 0.0  ;;  %v907_v3 = vsel %vm4197_vm14, %v896_v50, 0.0  ;;  %v994_v20 = vmul.f32 %v3374_v30, %v978_v39 }
 0x2d8   : > { %v963_v14 = vpop.permute.xlu1 %962  ;;  %v922_v51 = vmul.f32 %v3368_v61, %v904_v29 }
 0x2d9   : > { %v972_v12 = vsel %vm219_vm15, %v959_v60, %v963_v14  ;;  %v965_v15 = vpop.permute.xlu0 %964  ;;  %v951_v18 = vadd.f32 %v943_v49, %v927_v24  ;;  %v982_v49 = vsel %vm219_vm15, %v975_v42, 0.0 }
 0x2da   : > { %v979_v33 = vsel %vm220_vm4, %v972_v12, 0.0  ;;  %v973_v34 = vsel %vm219_vm15, %v961_v10, %v965_v15  ;;  %v946_v10 = vadd.f32 %v938_v7, %v922_v51 }
 0x2db   : > { %v995_v36 = vmul.f32 %v3374_v30, %v979_v33  ;;  %v983_v44 = vsel %vm220_vm4, %v973_v34, 0.0  ;;  %vm4198_vm4 = vmmov %vm4192_vm9  ;;  %vm2010_vm9 = vcmask 1046534  }
 0x2dc   : > { %v999_v48 = vmul.f32 %v3376_v40, %v983_v44  ;;  %v891_v52 = vpop.permute.xlu1 %890  ;;  %v1002_v32 = vadd.f32 %v994_v20, %v946_v10  ;;  %v998_v44 = vmul.f32 %v3376_v40, %v982_v49  ;;  %v1321_v20 = vld [vmem:[%s4179_s2 + $0x190] sm:$0xff]  ;;  %v1037_v49 = vld [vmem:[%s4178_s1 + $0x78] sm:$0xff] }
 0x2dd   : > { %v899_v43 = vsel %vm330_vm11, %v887_v16, %v891_v52  ;;  %v969_v45 = vpop.permute.xlu0 %968  ;;  %v1003_v56 = vadd.f32 %v995_v36, %v947_v35  ;;  %v941_v36 = vmul.f32 %v3372_v6, %v3344_v25 }
 0x2de   : > { %v910_v57 = vsel %vm4196_vm12, %v899_v43, 0.0  ;;  %v971_v58 = vsel %vm219_vm15, %v965_v15, %v969_v45  ;;  %v977_v59 = vsel %vm219_vm15, %v969_v45, %v957_v9  ;;  %v1007_v53 = vadd.f32 %v999_v48, %v951_v18  ;;  %v1288_v48 = vld [vmem:[%s4179_s2 + $0x88] sm:$0xff] }
 0x2df   : > { %v928_v63 = vmul.f32 %v3370_v38, %v910_v57  ;;  %v984_v0 = vsel %vm221_vm2, %v971_v58, 0.0  ;;  %v1021_v60 = vadd.f32 %v3380_v27, %v1003_v56  ;;  %v985_v54 = vsel %vm222_vm1, %v977_v59, 0.0  ;;  %v1272_v57 = vld [vmem:[%s4179_s2 + $0x8] sm:$0xff]  ;;  %v1319_v58 = vld [vmem:[%s4179_s2 + $0x180] sm:$0xff] }
 0x2e0   : > { %v1000_v2 = vmul.f32 %v3376_v40, %v984_v0  ;;  %v895_v13 = vpop.permute.xlu1 %894  ;;  %v1025_v9 = vadd.f32 %v3378_v62, %v1007_v53  ;;  %v1001_v29 = vmul.f32 %v3376_v40, %v985_v54  ;;  %v948_v18 = vadd.f32 %v940_v8, %v924_v23  ;;  %v1290_v0 = vld [vmem:[%s4179_s2 + $0x98] sm:$0xff]  ;;  %v1036_v54 = vld [vmem:[%s4178_s1 + $0x70] sm:$0xff] }
 0x2e1   : > { %v952_v16 = vadd.f32 %v944_v28, %v928_v63  ;;  %v897_v5 = vsel %vm330_vm11, %v891_v52, %v895_v13  ;;  %v903_v17 = vsel %vm330_vm11, %v895_v13, %v883_v11  ;;  %v1029_v19 = vmax.f32 %v1021_v60, 0.0  ;;  %v1289_v63 = vld [vmem:[%s4179_s2 + $0x90] sm:$0xff] }
 0x2e2   : > { %v908_v7 = vsel %vm231_vm10, %v903_v17, 0.0  ;;  %v911_v41 = vsel %vm4198_vm4, %v897_v5, 0.0  ;;  %v1033_v21 = vmax.f32 %v1025_v9, 0.0  ;;  %v925_v11 = vmul.f32 %v3368_v61, %v907_v3  ;;  %v1304_v5 = vld [vmem:[%s4179_s2 + $0x108] sm:$0xff]  ;;  %v1273_v17 = vld [vmem:[%s4179_s2 + $0x10] sm:$0xff] }
 0x2e3   : > { %v926_v24 = vmul.f32 %v3370_v38, %v908_v7  ;;  %v929_v28 = vmul.f32 %v3370_v38, %v911_v41  ;;  %v1008_v33 = vadd.f32 %v1000_v2, %v952_v16  ;;  %v1020_v40 = vadd.f32 %v3380_v27, %v1002_v32  ;;  %v1303_v16 = vld [vmem:[%s4179_s2 + $0x100] sm:$0xff]  ;;  %v1322_v7 = vld [vmem:[%s4179_s2 + $0x198] sm:$0xff]  ;;  %v1276_v32 = vld [vmem:[%s4179_s2 + $0x28] sm:$0xff] }
 0x2e4   : > { %v967_v12 = vpop.permute.xlu1 %966  ;;  %v2570_v15 = vpack.c.bf16 %v1033_v21, %v1029_v19  ;;  %v2578_v56 = vpack.c.bf16 %v1288_v48, %v1287_v46  ;;  %vm1064_vm10 = vcmask 130048   ;;  %v2582_v9 = vpack.c.bf16 %v1290_v0, %v1289_v63  ;;  %v1274_v19 = vld [vmem:[%s4179_s2 + $0x18] sm:$0xff]  ;;  %v1291_v41 = vld [vmem:[%s4179_s2 + $0xa0] sm:$0xff]  ;;  %v1292_v21 = vld [vmem:[%s4179_s2 + $0xa8] sm:$0xff] }
 0x2e5   : > { %v950_v34 = vadd.f32 %v942_v22, %v926_v24  ;;  %v953_v35 = vadd.f32 %v945_v26, %v929_v28  ;;  %v970_v39 = vsel %vm219_vm15, %v963_v14, %v967_v12  ;;  %v976_v61 = vsel %vm219_vm15, %v967_v12, %v3382_v1  ;;  %v1275_v12 = vld [vmem:[%s4179_s2 + $0x20] sm:$0xff]  ;;  %v1309_v46 = vld [vmem:[%s4179_s2 + $0x130] sm:$0xff]  ;;  %v1310_v48 = vld [vmem:[%s4179_s2 + $0x138] sm:$0xff] }
 0x2e6   : > { %v980_v38 = vsel %vm221_vm2, %v970_v39, 0.0  ;;  %2571 = vmatprep.subr.bf16.mxu0 %v2570_v15  ;;  %v981_v22 = vsel %vm222_vm1, %v976_v61, 0.0  ;;  %v949_v26 = vadd.f32 %v941_v36, %v925_v11  ;;  %v1026_v37 = vadd.f32 %v3378_v62, %v1008_v33  ;;  %v1305_v11 = vld [vmem:[%s4179_s2 + $0x110] sm:$0xff]  ;;  %v1323_v33 = vld [vmem:[%s4179_s2 + $0x1a0] sm:$0xff]  ;;  %v1294_v39 = vld [vmem:[%s4179_s2 + $0xb8] sm:$0xff] }
 0x2e7   : > { %v1009_v50 = vadd.f32 %v1001_v29, %v953_v35  ;;  %v996_v14 = vmul.f32 %v3374_v30, %v980_v38  ;;  %v997_v25 = vmul.f32 %v3374_v30, %v981_v22  ;;  %v1006_v6 = vadd.f32 %v998_v44, %v950_v34  ;;  %v1306_v29 = vld [vmem:[%s4179_s2 + $0x118] sm:$0xff]  ;;  %v1324_v34 = vld [vmem:[%s4179_s2 + $0x1a8] sm:$0xff]  ;;  %v1293_v35 = vld [vmem:[%s4179_s2 + $0xb0] sm:$0xff] }
 0x2e8   : > { %v1028_v52 = vmax.f32 %v1020_v40, 0.0  ;;  %v1034_v43 = vmax.f32 %v1026_v37, 0.0  ;;  %v2612_v23 = vpack.c.bf16 %v1304_v5, %v1303_v16  ;;  %v2584_v24 = vpack.c.bf16 %v1274_v19, %v1273_v17  ;;  %v1038_v36 = vld [vmem:[%s4178_s1 + $0x80] sm:$0xff]  ;;  %v1277_v22 = vld [vmem:[%s4179_s2 + $0x30] sm:$0xff]  ;;  %v1296_v37 = vld [vmem:[%s4179_s2 + $0xc8] sm:$0xff] }
 0x2e9   : > { %v1004_v1 = vadd.f32 %v996_v14, %v948_v18  ;;  %v1005_v51 = vadd.f32 %v997_v25, %v949_v26  ;;  %v1024_v47 = vadd.f32 %v3378_v62, %v1006_v6  ;;  %v1027_v8 = vadd.f32 %v3378_v62, %v1009_v50  ;;  %v1271_v62 = vld [vmem:[%s4179_s2] sm:$0xff]  ;;  %v1308_v50 = vld [vmem:[%s4179_s2 + $0x128] sm:$0xff]  ;;  %v1278_v26 = vld [vmem:[%s4179_s2 + $0x38] sm:$0xff] }
 0x2ea   : > { %v2580_v2 = vpack.c.bf16 %v1272_v57, %v1271_v62  ;;  %v2614_v28 = vpack.c.bf16 %v1322_v7, %v1321_v20  ;;  %v2586_v15 = vpack.c.bf16 %v1292_v21, %v1291_v41  ;;  %v2616_v44 = vpack.c.bf16 %v1306_v29, %v1305_v11  ;;  %v1307_v18 = vld [vmem:[%s4179_s2 + $0x120] sm:$0xff]  ;;  %v1325_v25 = vld [vmem:[%s4179_s2 + $0x1b0] sm:$0xff]  ;;  %v1326_v6 = vld [vmem:[%s4179_s2 + $0x1b8] sm:$0xff] }
 0x2eb   : > { %v1022_v30 = vadd.f32 %v3380_v27, %v1004_v1  ;;  %v1032_v42 = vmax.f32 %v1024_v47, 0.0  ;;  %v1023_v55 = vadd.f32 %v3380_v27, %v1005_v51  ;;  %v1035_v3 = vmax.f32 %v1027_v8, 0.0  ;;  %v1320_v27 = vld [vmem:[%s4179_s2 + $0x188] sm:$0xff]  ;;  %v1295_v40 = vld [vmem:[%s4179_s2 + $0xc0] sm:$0xff]  ;;  %v1282_v63 = vld [vmem:[%s4179_s2 + $0x58] sm:$0xff] }
 0x2ec   : > { %v2610_v13 = vpack.c.bf16 %v1320_v27, %v1319_v58  ;;  %v2588_v61 = vpack.c.bf16 %v1276_v32, %v1275_v12  ;;  %v2618_v38 = vpack.c.bf16 %v1324_v34, %v1323_v33  ;;  %v2590_v14 = vpack.c.bf16 %v1294_v39, %v1293_v35  ;;  %v1039_v1 = vld [vmem:[%s4178_s1 + $0x88] sm:$0xff]  ;;  %v1329_v0 = vld [vmem:[%s4179_s2 + $0x1d0] sm:$0xff]  ;;  %v1314_v5 = vld [vmem:[%s4179_s2 + $0x158] sm:$0xff] }
 0x2ed   : > { %v1030_v45 = vmax.f32 %v1022_v30, 0.0  ;;  %v2572_v59 = vpack.c.bf16 %v1032_v42, %v1028_v52  ;;  %v1031_v53 = vmax.f32 %v1023_v55, 0.0  ;;  %v2620_v51 = vpack.c.bf16 %v1308_v50, %v1307_v18  ;;  %v1279_v30 = vld [vmem:[%s4179_s2 + $0x40] sm:$0xff]  ;;  %v1280_v42 = vld [vmem:[%s4179_s2 + $0x48] sm:$0xff]  ;;  %v1313_v16 = vld [vmem:[%s4179_s2 + $0x150] sm:$0xff] }
 0x2ee   : > { %v2592_v47 = vpack.c.bf16 %v1278_v26, %v1277_v22  ;;  %v2622_v8 = vpack.c.bf16 %v1326_v6, %v1325_v25  ;;  %v2594_v52 = vpack.c.bf16 %v1296_v37, %v1295_v40  ;;  %v1327_v55 = vld [vmem:[%s4179_s2 + $0x1c0] sm:$0xff]  ;;  %v2624_v62 = vpack.c.bf16 %v1310_v48, %v1309_v46  ;;  %v1284_v7 = vld [vmem:[%s4179_s2 + $0x68] sm:$0xff]  ;;  %v1286_v32 = vld [vmem:[%s4179_s2 + $0x78] sm:$0xff]  ;;  %v1052_v25 = vpop.permute.xlu0 %1051 }
 0x2ef   : > { %v2576_v60 = vpack.c.bf16 %v1034_v43, %v1030_v45  ;;  %2573 = vmatpush1.bf16.msra.mxu0 %v2572_v59  ;;  %v2574_v10 = vpack.c.bf16 %v1035_v3, %v1031_v53  ;;  %v1328_v43 = vld [vmem:[%s4179_s2 + $0x1c8] sm:$0xff]  ;;  %v1297_v45 = vld [vmem:[%s4179_s2 + $0xd0] sm:$0xff]  ;;  %v2596_v57 = vpack.c.bf16 %v1280_v42, %v1279_v30  ;;  %v1311_v59 = vld [vmem:[%s4179_s2 + $0x140] sm:$0xff]  ;;  %v2632_v19 = vpack.c.bf16 %v1314_v5, %v1313_v16 }
 0x2f0   : > { %2579 = vmatprep.subr.bf16.mxu0 %v2578_v56  ;;  %v1298_v56 = vld [vmem:[%s4179_s2 + $0xd8] sm:$0xff]  ;;  %v2626_v58 = vpack.c.bf16 %v1328_v43, %v1327_v55  ;;  %v1312_v53 = vld [vmem:[%s4179_s2 + $0x148] sm:$0xff]  ;;  %v1281_v3 = vld [vmem:[%s4179_s2 + $0x50] sm:$0xff]  ;;  %vm1737_vm11 = vcmask 24576   ;;  %vm1995_vm15 = vcmask 1041409   ;;  %vm1998_vm1 = vcmask 1042434  }
 0x2f1   : > { %2575 = vmatprep.subr.bf16.mxu1 %v2574_v10  ;;  %v2598_v27 = vpack.c.bf16 %v1298_v56, %v1297_v45  ;;  %v1299_v10 = vld [vmem:[%s4179_s2 + $0xe0] sm:$0xff]  ;;  %v1316_v12 = vld [vmem:[%s4179_s2 + $0x168] sm:$0xff]  ;;  %v1333_v35 = vld [vmem:[%s4179_s2 + $0x1f0] sm:$0xff]  ;;  %vm2001_vm2 = vcmask 1043459   ;;  %vm2343_vm12 = vcmask 7168  }
 0x2f2   : > { %2429 = vmatmul.mubr.msk.f32.vlgmr.msra.gmra.mrb[0].mxu0 %vm1064_vm10, %v1036_v54  ;;  %2577 = vmatpush1.bf16.msra.mxu1 %v2576_v60  ;;  %v1330_v60 = vld [vmem:[%s4179_s2 + $0x1d8] sm:$0xff]  ;;  %v1283_v20 = vld [vmem:[%s4179_s2 + $0x60] sm:$0xff] }
 0x2f3   : > { %1147 = vmatprep.mubr.f32.mxu0 %v2817_v31  ;;  %2581 = vmatpush3.bf16.msra.mxu0 %v2580_v2  ;;  %v2628_v2 = vpack.c.bf16 %v1312_v53, %v1311_v59  ;;  %v2604_v41 = vpack.c.bf16 %v1284_v7, %v1283_v20  ;;  %v1331_v21 = vld [vmem:[%s4179_s2 + $0x1e0] sm:$0xff]  ;;  %v1334_v39 = vld [vmem:[%s4179_s2 + $0x1f8] sm:$0xff] }
 0x2f4   : > { %2611 = vmatprep.subr.bf16.mxu1 %v2610_v13  ;;  %2583 = vmatprep.subr.bf16.mxu0 %v2582_v9  ;;  %v2600_v13 = vpack.c.bf16 %v1282_v63, %v1281_v3  ;;  %v2630_v9 = vpack.c.bf16 %v1330_v60, %v1329_v0  ;;  %v1315_v11 = vld [vmem:[%s4179_s2 + $0x160] sm:$0xff]  ;;  %v1062_v63 = vpop.permute.xlu0 %1061 }
 0x2f5   : > { %2433 = vmatmul.mubr.msk.f32.vlgmr.msra.gmra.mrb[8].mxu1 %vm1064_vm10, %v1036_v54  ;;  %v1300_v54 = vld [vmem:[%s4179_s2 + $0xe8] sm:$0xff]  ;;  %v2636_v33 = vpack.c.bf16 %v1316_v12, %v1315_v11  ;;  %v1047_v18 = vpop.permute.xlu1 %1046 }
 0x2f6   : > { %2430 = vmatmul.mubr.msk.f32.gmra.mrb[2].mxu0 %vm1064_vm10, %v1037_v49  ;;  %1236 = vmatprep.mubr.f32.mxu1 %v2817_v31  ;;  %v2602_v17 = vpack.c.bf16 %v1300_v54, %v1299_v10 }
 0x2f7   : > { %1153 = vmatprep.mubr.f32.mxu0 %v2817_v31  ;;  %2613 = vmatpush3.bf16.msra.mxu1 %v2612_v23 }
 0x2f8   : > { %2585 = vmatpush3.bf16.msra.mxu0 %v2584_v24  ;;  %2615 = vmatprep.subr.bf16.mxu1 %v2614_v28  ;;  %v1301_v24 = vld [vmem:[%s4179_s2 + $0xf0] sm:$0xff]  ;;  %v1302_v28 = vld [vmem:[%s4179_s2 + $0xf8] sm:$0xff] }
 0x2f9   : > { %2434 = vmatmul.mubr.msk.f32.gmra.mrb[10].mxu1 %vm1064_vm10, %v1037_v49  ;;  %2587 = vmatprep.subr.bf16.mxu0 %v2586_v15  ;;  %v1332_v49 = vld [vmem:[%s4179_s2 + $0x1e8] sm:$0xff]  ;;  %v2606_v29 = vpack.c.bf16 %v1302_v28, %v1301_v24  ;;  %v1285_v15 = vld [vmem:[%s4179_s2 + $0x70] sm:$0xff] }
 0x2fa   : > { %2431 = vmatmul.mubr.msk.f32.gmra.mrb[4].mxu0 %vm1064_vm10, %v1038_v36  ;;  %1242 = vmatprep.mubr.f32.mxu1 %v2817_v31  ;;  %v2634_v23 = vpack.c.bf16 %v1332_v49, %v1331_v21  ;;  %v2608_v34 = vpack.c.bf16 %v1286_v32, %v1285_v15  ;;  %v2818_v15 = vmov 1966171168  }
 0x2fb   : > { %1159 = vmatprep.mubr.f32.mxu0 %v2817_v31  ;;  %2617 = vmatpush3.bf16.msra.mxu1 %v2616_v44  ;;  %v1317_v44 = vld [vmem:[%s4179_s2 + $0x170] sm:$0xff]  ;;  %v1511_v32 = vunpack.c.l.s4 %v2818_v15 }
 0x2fc   : > { %2589 = vmatpush3.bf16.msra.mxu0 %v2588_v61  ;;  %2619 = vmatprep.subr.bf16.mxu1 %v2618_v38  ;;  %v1318_v61 = vld [vmem:[%s4179_s2 + $0x178] sm:$0xff] }
 0x2fd   : > { %2435 = vmatmul.mubr.msk.f32.gmra.mrb[12].mxu1 %vm1064_vm10, %v1038_v36  ;;  %2591 = vmatprep.subr.bf16.mxu0 %v2590_v14  ;;  %v2638_v36 = vpack.c.bf16 %v1334_v39, %v1333_v35  ;;  %v2640_v38 = vpack.c.bf16 %v1318_v61, %v1317_v44 }
 0x2fe   : > { %2432 = vmatmul.mubr.msk.f32.gmra.mrb[6].mxu0 %vm1064_vm10, %v1039_v1  ;;  %1248 = vmatprep.mubr.f32.mxu1 %v2817_v31 }
 0x2ff   : > { %2621 = vmatpush3.bf16.msra.mxu1 %v2620_v51 }
 0x300   : > { %2593 = vmatpush3.bf16.msra.mxu0 %v2592_v47  ;;  %2623 = vmatprep.subr.bf16.mxu1 %v2622_v8 }
 0x301   : > { %2436 = vmatmul.mubr.msk.f32.gmra.mrb[14].mxu1 %vm1064_vm10, %v1039_v1  ;;  %2595 = vmatprep.subr.bf16.mxu0 %v2594_v52  ;;  %v1057_v52 = vpop.permute.xlu1 %1056 }
 0x303   : > { %2625 = vmatpush3.bf16.msra.mxu1 %v2624_v62 }
 0x304   : > { %2597 = vmatpush3.bf16.msra.mxu0 %v2596_v57  ;;  %2627 = vmatprep.subr.bf16.mxu1 %v2626_v58 }
 0x305   : > { %2599 = vmatprep.subr.bf16.mxu0 %v2598_v27 }
 0x307   : > { %2629 = vmatpush3.bf16.msra.mxu1 %v2628_v2 }
 0x308   : > { %2601 = vmatpush3.bf16.msra.mxu0 %v2600_v13  ;;  %2631 = vmatprep.subr.bf16.mxu1 %v2630_v9 }
 0x309   : > { %2603 = vmatprep.subr.bf16.mxu0 %v2602_v17 }
 0x30b   : > { %2633 = vmatpush3.bf16.msra.mxu1 %v2632_v19 }
 0x30c   : > { %2605 = vmatpush3.bf16.msra.mxu0 %v2604_v41  ;;  %2635 = vmatprep.subr.bf16.mxu1 %v2634_v23 }
 0x30d   : > { %2607 = vmatprep.subr.bf16.mxu0 %v2606_v29 }
 0x30f   : > { %2637 = vmatpush3.bf16.msra.mxu1 %v2636_v33 }
 0x310   : > { %2609 = vmatpush3.bf16.msra.mxu0 %v2608_v34  ;;  %2639 = vmatprep.subr.bf16.mxu1 %v2638_v36  ;;  %v1512_v34 = vunpack.c.0.s8 %v1511_v32 }
 0x313   : > { %2641 = vmatpush3.bf16.msra.mxu1 %v2640_v38  ;;  %v3700_v38 = vsub.s32 %v1512_v34, %v2898_v4 }
 0x3c5   : > { %v1143_v50 = vpop.f32.mrb[0].mxu0 }
 0x3c6   : > { %v1144_v22 = vadd.f32 %v1143_v50, %v1047_v18  ;;  %v1145_v14 = vpop.f32.mrb[1].mxu0 }
 0x3c7   : > { %v1146_v26 = vadd.f32 %v1145_v14, %v1047_v18 }
 0x3c8   : > { %v1232_v6 = vpop.f32.mrb[8].mxu1  ;;  %v1255_v47 = vmax.f32 %v1144_v22, 0.0 }
 0x3c9   : > { %v1256_v40 = vmax.f32 %v1146_v26, 0.0  ;;  %v1233_v37 = vadd.f32 %v1232_v6, %v1047_v18  ;;  %v1149_v1 = vpop.f32.mrb[2].mxu0  ;;  %v1234_v51 = vpop.f32.mrb[9].mxu1 }
 0x3ca   : > { %v1150_v8 = vadd.f32 %v1149_v1, %v1052_v25  ;;  %v1235_v46 = vadd.f32 %v1234_v51, %v1047_v18  ;;  %v1151_v48 = vpop.f32.mrb[3].mxu0 }
 0x3cb   : > { %v1152_v30 = vadd.f32 %v1151_v48, %v1052_v25  ;;  %1399 = vmatprep.mubr.f32.mxu0 %v1256_v40  ;;  %v1257_v43 = vmax.f32 %v1233_v37, 0.0 }
 0x3cc   : > { %v1258_v42 = vmax.f32 %v1235_v46, 0.0  ;;  %v1238_v55 = vpop.f32.mrb[10].mxu1  ;;  %1400 = vmatmul.mubr.f32.vlgmr.msra.gmra.mrb[8].mxu0 %v1255_v47  ;;  %v1259_v58 = vmax.f32 %v1150_v8, 0.0 }
 0x3cd   : > { %v1260_v45 = vmax.f32 %v1152_v30, 0.0  ;;  %v1239_v56 = vadd.f32 %v1238_v55, %v1052_v25  ;;  %v1155_v62 = vpop.f32.mrb[4].mxu0  ;;  %v1240_v57 = vpop.f32.mrb[11].mxu1 }
 0x3ce   : > { %v1156_v59 = vadd.f32 %v1155_v62, %v1057_v52  ;;  %v1241_v53 = vadd.f32 %v1240_v57, %v1052_v25  ;;  %v1157_v3 = vpop.f32.mrb[5].mxu0  ;;  %1484 = vmatprep.mubr.f32.mxu1 %v1258_v42 }
 0x3cf   : > { %v1158_v27 = vadd.f32 %v1157_v3, %v1057_v52  ;;  %1404 = vmatprep.mubr.f32.mxu0 %v1260_v45  ;;  %1485 = vmatmul.mubr.f32.vlgmr.msra.gmra.mrb[16].mxu1 %v1257_v43  ;;  %v1261_v10 = vmax.f32 %v1239_v56, 0.0 }
 0x3d0   : > { %v1262_v0 = vmax.f32 %v1241_v53, 0.0  ;;  %v1244_v60 = vpop.f32.mrb[12].mxu1  ;;  %1405 = vmatmul.mubr.f32.gmra.mrb[10].mxu0 %v1259_v58  ;;  %v1263_v16 = vmax.f32 %v1156_v59, 0.0 }
 0x3d1   : > { %v1264_v54 = vmax.f32 %v1158_v27, 0.0  ;;  %v1245_v2 = vadd.f32 %v1244_v60, %v1057_v52  ;;  %v1161_v13 = vpop.f32.mrb[6].mxu0  ;;  %v1246_v9 = vpop.f32.mrb[13].mxu1 }
 0x3d2   : > { %v1162_v5 = vadd.f32 %v1161_v13, %v1062_v63  ;;  %v1247_v17 = vadd.f32 %v1246_v9, %v1057_v52  ;;  %v1163_v19 = vpop.f32.mrb[7].mxu0  ;;  %1489 = vmatprep.mubr.f32.mxu1 %v1262_v0 }
 0x3d3   : > { %v1164_v20 = vadd.f32 %v1163_v19, %v1062_v63  ;;  %1409 = vmatprep.mubr.f32.mxu0 %v1264_v54  ;;  %1490 = vmatmul.mubr.f32.gmra.mrb[18].mxu1 %v1261_v10  ;;  %v1265_v21 = vmax.f32 %v1245_v2, 0.0 }
 0x3d4   : > { %v1266_v7 = vmax.f32 %v1247_v17, 0.0  ;;  %v1250_v41 = vpop.f32.mrb[14].mxu1  ;;  %1410 = vmatmul.mubr.f32.gmra.mrb[12].mxu0 %v1263_v16  ;;  %v1267_v28 = vmax.f32 %v1162_v5, 0.0 }
 0x3d5   : > { %v1268_v49 = vmax.f32 %v1164_v20, 0.0  ;;  %v1251_v23 = vadd.f32 %v1250_v41, %v1062_v63  ;;  %v1252_v24 = vpop.f32.mrb[15].mxu1 }
 0x3d6   : > { %v1253_v11 = vadd.f32 %v1252_v24, %v1062_v63  ;;  %1494 = vmatprep.mubr.f32.mxu1 %v1266_v7 }
 0x3d7   : > { %1414 = vmatprep.mubr.f32.mxu0 %v1268_v49  ;;  %1495 = vmatmul.mubr.f32.gmra.mrb[20].mxu1 %v1265_v21  ;;  %v1269_v12 = vmax.f32 %v1251_v23, 0.0 }
 0x3d8   : > { %v1270_v29 = vmax.f32 %v1253_v11, 0.0  ;;  %1415 = vmatmul.mubr.f32.gmra.mrb[14].mxu0 %v1267_v28 }
 0x3d9   : > { %2567 = vmatprep.mubr.msk.f32.mxu0 %vm2820_vm8, %v2817_v31 }
 0x3da   : > { %1499 = vmatprep.mubr.f32.mxu1 %v1270_v29 }
 0x3db   : > { %1500 = vmatmul.mubr.f32.gmra.mrb[22].mxu1 %v1269_v12 }
 0x49f   : > { %v2474_v33 = vpop.f32.mrb[8].mxu0 }
 0x4a0   : > { %v2475_v35 = vpop.f32.mrb[9].mxu0 }
 0x4a1   : > { %v2476_v39 = vadd.f32 %v2475_v35, %v2474_v33 }
 0x4a2   : > { %v2518_v36 = vpop.f32.mrb[16].mxu1 }
 0x4a3   : > { %v2477_v44 = vpop.f32.mrb[10].mxu0  ;;  %v2519_v61 = vpop.f32.mrb[17].mxu1 }
 0x4a4   : > { %v2520_v18 = vadd.f32 %v2519_v61, %v2518_v36  ;;  %v2478_v50 = vpop.f32.mrb[11].mxu0 }
 0x4a5   : > { %v2479_v22 = vadd.f32 %v2478_v50, %v2477_v44 }
 0x4a6   : > { %v1487_v14 = vadd.f32 %v2520_v18, %v2476_v39  ;;  %v2521_v26 = vpop.f32.mrb[18].mxu1 }
 0x4a7   : > { %v2480_v25 = vpop.f32.mrb[12].mxu0  ;;  %v2522_v6 = vpop.f32.mrb[19].mxu1 }
 0x4a8   : > { %v1509_v40 = vcombine.high %v1487_v14, %v1487_v14  ;;  %v1516_v37 = vrot.slane %v1487_v14, %v3700_v38  ;;  %v2523_v1 = vadd.f32 %v2522_v6, %v2521_v26  ;;  %v2481_v51 = vpop.f32.mrb[13].mxu0 }
 0x4a9   : > { %v2482_v47 = vadd.f32 %v2481_v51, %v2480_v25 }
 0x4aa   : > { %v1523_v8 = vrot.slane %v1509_v40, %v3700_v38  ;;  %v1524_v46 = vcombine.high %v1516_v37, %v1516_v37  ;;  %v1492_v48 = vadd.f32 %v2523_v1, %v2479_v22  ;;  %v2524_v4 = vpop.f32.mrb[20].mxu1  ;;  %v1532_v30 = vrot.slane %v1516_v37, %v3700_v38 }
 0x4ab   : > { %v2483_v52 = vpop.f32.mrb[14].mxu0  ;;  %v2525_v42 = vpop.f32.mrb[21].mxu1 }
 0x4ac   : > { %v1558_v55 = vcombine.high %v1492_v48, %v1492_v48  ;;  %v1565_v43 = vrot.slane %v1492_v48, %v3700_v38  ;;  %v2526_v45 = vadd.f32 %v2525_v42, %v2524_v4  ;;  %v2484_v56 = vpop.f32.mrb[15].mxu0  ;;  %v1738_v62 = vsel %vm1737_vm11, %v1532_v30, 0.0 }
 0x4ad   : > { %v2485_v57 = vadd.f32 %v2484_v56, %v2483_v52  ;;  %1739 = vadd.xlane.f32.xlu0 %v1738_v62  ;;  %v1546_v58 = vrot.slane %v1524_v46, %v3700_v38  ;;  %v1834_v63 = vsel %vm1737_vm11, %v1532_v30, -inf  ;;  %v3715_v2 = vrot.slane %v1523_v8, %v3700_v38 }
 0x4ae   : > { %v1572_v59 = vrot.slane %v1558_v55, %v3700_v38  ;;  %v3710_v53 = vrot.slane %v1565_v43, %v3700_v38  ;;  %v1497_v3 = vadd.f32 %v2526_v45, %v2482_v47  ;;  %v2527_v27 = vpop.f32.mrb[22].mxu1  ;;  %v1573_v0 = vcombine.high %v1565_v43, %v1565_v43 }
 0x4af   : > { %v1741_v60 = vsel %vm1737_vm11, %v1546_v58, 0.0  ;;  %v2528_v10 = vpop.f32.mrb[23].mxu1  ;;  %v1556_v54 = vcombine.high %v1546_v58, %v1546_v58  ;;  %v1554_v5 = vcombine.high %v1532_v30, %v1532_v30  ;;  %v1525_v24 = vcombine.high %v1523_v8, %v1523_v8 }
 0x4b0   : > { %v1607_v13 = vcombine.high %v1497_v3, %v1497_v3  ;;  %v1614_v9 = vrot.slane %v1497_v3, %v3700_v38  ;;  %1742 = vadd.xlane.f32.xlu1 %v1741_v60  ;;  %v2529_v16 = vadd.f32 %v2528_v10, %v2527_v27  ;;  %v3723_v7 = vrot.slane %v1572_v59, %v3700_v38 }
 0x4b1   : > { %1835 = vmax.xlane.f32.xlu0 %v1834_v63  ;;  %v1747_v20 = vsel %vm1737_vm11, %v1556_v54, 0.0  ;;  %v3726_v41 = vrot.slane %v1573_v0, %v3700_v38  ;;  %v1744_v23 = vsel %vm1737_vm11, %v1554_v5, 0.0  ;;  %v1843_v29 = vsel %vm1737_vm11, %v1556_v54, -inf }
 0x4b2   : > { %v3719_v17 = vrot.slane %v1607_v13, %v3700_v38  ;;  %v1502_v19 = vadd.f32 %v2529_v16, %v2485_v57  ;;  %v1603_v12 = vcombine.high %v3710_v53, %v3710_v53  ;;  %v3736_v15 = vrot.slane %v1525_v24, %v3700_v38 }
 0x4b3   : > { %v1574_v32 = vcombine.high %v1572_v59, %v1572_v59  ;;  %v1622_v33 = vcombine.high %v1614_v9, %v1614_v9  ;;  %v1750_v35 = vsel %vm1737_vm11, %v3715_v2, 0.0  ;;  %v1630_v44 = vrot.slane %v1614_v9, %v3700_v38 }
 0x4b4   : > { %v1656_v21 = vcombine.high %v1502_v19, %v1502_v19  ;;  %v1663_v49 = vrot.slane %v1502_v19, %v3700_v38  ;;  %1748 = vadd.xlane.f32.xlu1 %v1747_v20  ;;  %v1768_v36 = vsel %vm1737_vm11, %v1603_v12, 0.0  ;;  %v1837_v61 = vsel %vm1737_vm11, %v1546_v58, -inf }
 0x4b5   : > { %1745 = vadd.xlane.f32.xlu0 %v1744_v23  ;;  %v3741_v39 = vrot.slane %v1574_v32, %v3700_v38  ;;  %v1840_v18 = vsel %vm1737_vm11, %v1554_v5, -inf  ;;  %v1644_v50 = vrot.slane %v1622_v33, %v3700_v38  ;;  %v1774_v14 = vsel %vm1737_vm11, %v3723_v7, 0.0 }
 0x4b6   : > { %v1670_v28 = vrot.slane %v1656_v21, %v3700_v38  ;;  %v1679_v11 = vrot.slane %v1663_v49, %v3700_v38  ;;  %v1671_v34 = vcombine.high %v1663_v49, %v1663_v49  ;;  %v1861_v26 = vsel %vm1737_vm11, %v3726_v41, -inf }
 0x4b7   : > { %v3754_v25 = vsel %vm1737_vm11, %v1630_v44, 0.0  ;;  %v3757_v6 = vsel %vm1737_vm11, %v1630_v44, -inf  ;;  %v1654_v40 = vcombine.high %v1644_v50, %v1644_v50  ;;  %v3760_v37 = vsel %vm1737_vm11, %v1644_v50, 0.0 }
 0x4b8   : > { %1844 = vmax.xlane.f32.xlu1 %v1843_v29  ;;  %v1693_v22 = vrot.slane %v1671_v34, %v3700_v38  ;;  %v1652_v51 = vcombine.high %v1630_v44, %v1630_v44  ;;  %v1701_v47 = vcombine.high %v1679_v11, %v1679_v11  ;;  %v1637_v8 = vrot.slane %v3719_v17, %v3700_v38 }
 0x4b9   : > { %1751 = vadd.xlane.f32.xlu0 %v1750_v35  ;;  %v1686_v46 = vrot.slane %v1670_v28, %v3700_v38  ;;  %v3769_v48 = vsel %vm1737_vm11, %v1644_v50, -inf  ;;  %v3772_v4 = vsel %vm1737_vm11, %v1654_v40, 0.0  ;;  %v3775_v30 = vsel %vm1737_vm11, %v1654_v40, -inf }
 0x4ba   : > { %v3763_v1 = vsel %vm1737_vm11, %v1693_v22, 0.0  ;;  %v3778_v52 = vsel %vm1737_vm11, %v1652_v51, 0.0  ;;  %v3781_v42 = vsel %vm1737_vm11, %v1693_v22, -inf  ;;  %v3784_v55 = vsel %vm1737_vm11, %v1701_v47, 0.0 }
 0x4bb   : > { %v3787_v43 = vsel %vm1737_vm11, %v1637_v8, 0.0  ;;  %v3790_v45 = vsel %vm1737_vm11, %v1686_v46, 0.0  ;;  %v3793_v56 = vsel %vm1737_vm11, %v1652_v51, -inf  ;;  %v3796_v62 = vsel %vm1737_vm11, %v1701_v47, -inf }
 0x4bc   : > { %1769 = vadd.xlane.f32.xlu1 %v1768_v36  ;;  %v3799_v57 = vsel %vm1737_vm11, %v1637_v8, -inf  ;;  %v3802_v58 = vsel %vm1737_vm11, %v1686_v46, -inf  ;;  %v3805_v59 = vsel %vm1737_vm11, %v1679_v11, 0.0  ;;  %v1703_v3 = vcombine.high %v1693_v22, %v1693_v22 }
 0x4bd   : > { %1838 = vmax.xlane.f32.xlu0 %v1837_v61  ;;  %v1623_v27 = vcombine.high %v3719_v17, %v3719_v17  ;;  %v1672_v63 = vcombine.high %v1670_v28, %v1670_v28  ;;  %v1653_v0 = vcombine.high %v1637_v8, %v1637_v8  ;;  %v1846_v60 = vsel %vm1737_vm11, %v3715_v2, -inf }
 0x4be   : > { %v1864_v10 = vsel %vm1737_vm11, %v1603_v12, -inf  ;;  %v1702_v54 = vcombine.high %v1686_v46, %v1686_v46  ;;  %v3813_v13 = vsel %vm1737_vm11, %v1679_v11, -inf  ;;  %v3816_v9 = vsel %vm1737_vm11, %v1703_v3, 0.0 }
 0x4bf   : > { %v1651_v16 = vrot.slane %v1623_v27, %v3700_v38  ;;  %v1700_v5 = vrot.slane %v1672_v63, %v3700_v38  ;;  %v3821_v17 = vsel %vm1737_vm11, %v1653_v0, 0.0  ;;  %v3827_v20 = vsel %vm1737_vm11, %v1703_v3, -inf }
 0x4c0   : > { %1775 = vadd.xlane.f32.xlu1 %v1774_v14  ;;  %v3824_v19 = vsel %vm1737_vm11, %v1702_v54, 0.0  ;;  %v3830_v21 = vsel %vm1737_vm11, %v1653_v0, -inf  ;;  %v3833_v49 = vsel %vm1737_vm11, %v1702_v54, -inf  ;;  %v1762_v11 = vsel %vm1737_vm11, %v3710_v53, 0.0 }
 0x4c1   : > { %1841 = vmax.xlane.f32.xlu0 %v1840_v18  ;;  %v3836_v23 = vsel %vm1737_vm11, %v1651_v16, 0.0  ;;  %v3839_v38 = vsel %vm1737_vm11, %v1700_v5, 0.0  ;;  %v3842_v24 = vsel %vm1737_vm11, %v1651_v16, -inf  ;;  %v3845_v28 = vsel %vm1737_vm11, %v1700_v5, -inf }
 0x4c2   : > { %v1655_v29 = vcombine.high %v1651_v16, %v1651_v16  ;;  %v1704_v12 = vcombine.high %v1700_v5, %v1700_v5  ;;  %v1870_v36 = vsel %vm1737_vm11, %v3723_v7, -inf  ;;  %v1605_v44 = vcombine.high %v3726_v41, %v3726_v41 }
 0x4c3   : > { %v1753_v61 = vsel %vm1737_vm11, %v3736_v15, 0.0  ;;  %v1555_v18 = vcombine.high %v3715_v2, %v3715_v2  ;;  %v1777_v14 = vsel %vm1737_vm11, %v3741_v39, 0.0  ;;  %v1858_v40 = vsel %vm1737_vm11, %v3710_v53, -inf }
 0x4c4   : > { %1862 = vmax.xlane.f32.xlu1 %v1861_v26  ;;  %v3850_v32 = vsel %vm1737_vm11, %v1655_v29, 0.0  ;;  %v3853_v33 = vsel %vm1737_vm11, %v1704_v12, 0.0  ;;  %v3856_v34 = vsel %vm1737_vm11, %v1655_v29, -inf  ;;  %v3859_v35 = vsel %vm1737_vm11, %v1704_v12, -inf }
 0x4c5   : > { %1847 = vmax.xlane.f32.xlu0 %v1846_v60  ;;  %v1771_v50 = vsel %vm1737_vm11, %v1605_v44, 0.0  ;;  %v1756_v22 = vsel %vm1737_vm11, %v1555_v18, 0.0  ;;  %v1604_v26 = vcombine.high %v3723_v7, %v3723_v7  ;;  %v1849_v51 = vsel %vm1737_vm11, %v3736_v15, -inf }
 0x4c6   : > { %v1867_v47 = vsel %vm1737_vm11, %v1605_v44, -inf  ;;  %v1852_v8 = vsel %vm1737_vm11, %v1555_v18, -inf  ;;  %v1873_v7 = vsel %vm1737_vm11, %v3741_v39, -inf  ;;  %v1765_v53 = vsel %vm1737_vm11, %v3726_v41, 0.0 }
 0x4c7   : > { %v1780_v2 = vsel %vm1737_vm11, %v1604_v26, 0.0  ;;  %v1557_v46 = vcombine.high %v3736_v15, %v3736_v15  ;;  %v1876_v3 = vsel %vm1737_vm11, %v1604_v26, -inf  ;;  %v1606_v27 = vcombine.high %v3741_v39, %v3741_v39 }
 0x4c8   : > { %1865 = vmax.xlane.f32.xlu1 %v1864_v10  ;;  %v2819_v15 = vmov 0.0|0.0  }
 0x4c9   : > { %1763 = vadd.xlane.f32.xlu0 %v1762_v11  ;;  %v1759_v63 = vsel %vm1737_vm11, %v1557_v46, 0.0  ;;  %v1783_v0 = vsel %vm1737_vm11, %v1606_v27, 0.0  ;;  %v1855_v60 = vsel %vm1737_vm11, %v1557_v46, -inf  ;;  %v1879_v41 = vsel %vm1737_vm11, %v1606_v27, -inf  ;;  %2642 = vmatprep.subr.bf16.mxu0 %v2819_v15 }
 0x4cc   : > { %1871 = vmax.xlane.f32.xlu1 %v1870_v36 }
 0x4cd   : > { %1754 = vadd.xlane.f32.xlu0 %v1753_v61 }
 0x4d0   : > { %1772 = vadd.xlane.f32.xlu1 %v1771_v50 }
 0x4d1   : > { %1757 = vadd.xlane.f32.xlu0 %v1756_v22 }
 0x4d4   : > { %1778 = vadd.xlane.f32.xlu1 %v1777_v14 }
 0x4d5   : > { %1859 = vmax.xlane.f32.xlu0 %v1858_v40 }
 0x4d8   : > { %1781 = vadd.xlane.f32.xlu1 %v1780_v2 }
 0x4d9   : > { %1850 = vmax.xlane.f32.xlu0 %v1849_v51 }
 0x4dc   : > { %1868 = vmax.xlane.f32.xlu1 %v1867_v47 }
 0x4dd   : > { %1853 = vmax.xlane.f32.xlu0 %v1852_v8 }
 0x4e0   : > { %1874 = vmax.xlane.f32.xlu1 %v1873_v7 }
 0x4e1   : > { %1766 = vadd.xlane.f32.xlu0 %v1765_v53 }
 0x4e4   : > { %1877 = vmax.xlane.f32.xlu1 %v1876_v3 }
 0x4e5   : > { %1760 = vadd.xlane.f32.xlu0 %v1759_v63 }
 0x4e8   : > { %1784 = vadd.xlane.f32.xlu1 %v1783_v0 }
 0x4e9   : > { %1856 = vmax.xlane.f32.xlu0 %v1855_v60 }
 0x4ec   : > { %1880 = vmax.xlane.f32.xlu1 %v1879_v41 }
 0x4ed   : > { %1787 = vadd.xlane.f32.xlu0 %v3754_v25 }
 0x4f0   : > { %1796 = vadd.xlane.f32.xlu1 %v3772_v4 }
 0x4f1   : > { %1883 = vmax.xlane.f32.xlu0 %v3757_v6 }
 0x4f4   : > { %1892 = vmax.xlane.f32.xlu1 %v3775_v30 }
 0x4f5   : > { %1790 = vadd.xlane.f32.xlu0 %v3760_v37 }
 0x4f8   : > { %1814 = vadd.xlane.f32.xlu1 %v3763_v1 }
 0x4f9   : > { %1793 = vadd.xlane.f32.xlu0 %v3778_v52 }
 0x4fc   : > { %1817 = vadd.xlane.f32.xlu1 %v3784_v55 }
 0x4fd   : > { %1799 = vadd.xlane.f32.xlu0 %v3787_v43 }
 0x500   : > { %1823 = vadd.xlane.f32.xlu1 %v3790_v45 }
 0x501   : > { %1886 = vmax.xlane.f32.xlu0 %v3769_v48 }
 0x504   : > { %1910 = vmax.xlane.f32.xlu1 %v3781_v42 }
 0x505   : > { %1889 = vmax.xlane.f32.xlu0 %v3793_v56 }
 0x508   : > { %1913 = vmax.xlane.f32.xlu1 %v3796_v62 }
 0x509   : > { %1895 = vmax.xlane.f32.xlu0 %v3799_v57 }
 0x50c   : > { %1919 = vmax.xlane.f32.xlu1 %v3802_v58 }
 0x50d   : > { %1811 = vadd.xlane.f32.xlu0 %v3805_v59 }
 0x510   : > { %1820 = vadd.xlane.f32.xlu1 %v3816_v9 }
 0x511   : > { %1802 = vadd.xlane.f32.xlu0 %v3836_v23 }
 0x514   : > { %1826 = vadd.xlane.f32.xlu1 %v3839_v38 }
 0x515   : > { %1805 = vadd.xlane.f32.xlu0 %v3821_v17 }
 0x518   : > { %1829 = vadd.xlane.f32.xlu1 %v3824_v19 }
 0x519   : > { %1907 = vmax.xlane.f32.xlu0 %v3813_v13 }
 0x51c   : > { %1916 = vmax.xlane.f32.xlu1 %v3827_v20 }
 0x51d   : > { %1898 = vmax.xlane.f32.xlu0 %v3842_v24 }
 0x520   : > { %1922 = vmax.xlane.f32.xlu1 %v3845_v28 }
 0x521   : > { %1808 = vadd.xlane.f32.xlu0 %v3850_v32 }
 0x524   : > { %1832 = vadd.xlane.f32.xlu1 %v3853_v33 }
 0x525   : > { %1901 = vmax.xlane.f32.xlu0 %v3830_v21 }
 0x528   : > { %1925 = vmax.xlane.f32.xlu1 %v3833_v49 }
 0x529   : > { %1904 = vmax.xlane.f32.xlu0 %v3856_v34 }
 0x52c   : > { %1928 = vmax.xlane.f32.xlu1 %v3859_v35 }
 0x53a   : > { %v3928_v39 = vpop.xlane.xlu0 %1739 }
 0x53b   : > { %v1930_v1 = vmul.f32 0.25, %v3928_v39 }
 0x53d   : > { %v3930_v25 = vpop.xlane.xlu1 %1742 }
 0x53e   : > { %v1931_v6 = vmul.f32 0.25, %v3930_v25  ;;  %v1836_v37 = vpop.xlane.xlu0 %1835  ;;  %v1994_v40 = vrot.slane %v3930_v25, 7 }
 0x540   : > { %v2185_v48 = vrot.slane %v1931_v6, 7  ;;  %v1996_v46 = vsel %vm1995_vm15, %v1994_v40, %v3928_v39 }
 0x541   : > { %v3934_v4 = vpop.xlane.xlu1 %1748 }
 0x542   : > { %v2186_v30 = vsel %vm1995_vm15, %v2185_v48, %v1930_v1  ;;  %v1933_v52 = vmul.f32 0.25, %v3934_v4  ;;  %v1746_v42 = vpop.xlane.xlu0 %1745  ;;  %v2000_v0 = vrot.slane %v3934_v4, 5 }
 0x543   : > { %v1932_v55 = vmul.f32 0.25, %v1746_v42  ;;  %v1997_v47 = vrot.slane %v1746_v42, 6 }
 0x544   : > { %v2189_v56 = vrot.slane %v1933_v52, 5 }
 0x545   : > { %v2187_v43 = vrot.slane %v1932_v55, 6  ;;  %v1845_v45 = vpop.xlane.xlu1 %1844  ;;  %v1999_v27 = vsel %vm1998_vm1, %v1997_v47, %v1996_v46 }
 0x546   : > { %v3938_v62 = vpop.xlane.xlu0 %1751  ;;  %v2097_v21 = vrot.slane %v1845_v45, 5  ;;  %v2002_v1 = vsel %vm2001_vm2, %v2000_v0, %v1999_v27 }
 0x547   : > { %v2188_v57 = vsel %vm1998_vm1, %v2187_v43, %v2186_v30  ;;  %v1934_v58 = vmul.f32 0.25, %v3938_v62  ;;  %v2003_v63 = vrot.slane %v3938_v62, 4 }
 0x548   : > { %v2190_v59 = vsel %vm2001_vm2, %v2189_v56, %v2188_v57 }
 0x549   : > { %v2191_v10 = vrot.slane %v1934_v58, 4  ;;  %v3944_v54 = vpop.xlane.xlu1 %1769  ;;  %v2005_v52 = vsel %vm2004_vm3, %v2003_v63, %v2002_v1 }
 0x54a   : > { %v1839_v13 = vpop.xlane.xlu0 %1838  ;;  %v1940_v25 = vmul.f32 0.25, %v3944_v54  ;;  %v2017_v43 = vrot.slane %v3944_v54, 6 }
 0x54b   : > { %v2192_v9 = vsel %vm2004_vm3, %v2191_v10, %v2190_v59  ;;  %v2093_v16 = vrot.slane %v1839_v13, 7 }
 0x54c   : > { %v2201_v58 = vrot.slane %v1940_v25, 6 }
 0x54d   : > { %v2094_v5 = vsel %vm1995_vm15, %v2093_v16, %v1836_v37  ;;  %v3948_v17 = vpop.xlane.xlu1 %1775 }
 0x54e   : > { %v1842_v19 = vpop.xlane.xlu0 %1841  ;;  %v1942_v48 = vmul.f32 0.25, %v3948_v17  ;;  %v2021_v59 = vrot.slane %v3948_v17, 4 }
 0x54f   : > { %v2095_v20 = vrot.slane %v1842_v19, 6 }
 0x550   : > { %v2205_v16 = vrot.slane %v1942_v48, 4 }
 0x551   : > { %v2096_v49 = vsel %vm1998_vm1, %v2095_v20, %v2094_v5  ;;  %v1863_v23 = vpop.xlane.xlu1 %1862 }
 0x552   : > { %v1848_v38 = vpop.xlane.xlu0 %1847  ;;  %v2098_v31 = vsel %vm2001_vm2, %v2097_v21, %v2096_v49  ;;  %v2107_v18 = vrot.slane %v1863_v23, 7 }
 0x553   : > { %v2099_v24 = vrot.slane %v1848_v38, 4 }
 0x555   : > { %v2100_v28 = vsel %vm2004_vm3, %v2099_v24, %v2098_v31  ;;  %v1866_v11 = vpop.xlane.xlu1 %1865 }
 0x556   : > { %v3953_v29 = vpop.xlane.xlu0 %1763  ;;  %v2109_v14 = vrot.slane %v1866_v11, 6 }
 0x557   : > { %v1938_v5 = vmul.f32 0.25, %v3953_v29 }
 0x559   : > { %v1872_v12 = vpop.xlane.xlu1 %1871 }
 0x55a   : > { %v1755_v32 = vpop.xlane.xlu0 %1754  ;;  %v2113_v30 = vrot.slane %v1872_v12, 4 }
 0x55b   : > { %v1935_v33 = vmul.f32 0.25, %v1755_v32  ;;  %v2006_v42 = vrot.slane %v1755_v32, 3 }
 0x55d   : > { %v2193_v34 = vrot.slane %v1935_v33, 3  ;;  %v3955_v35 = vpop.xlane.xlu1 %1772  ;;  %v2008_v54 = vsel %vm2007_vm13, %v2006_v42, %v2005_v52 }
 0x55e   : > { %v1758_v36 = vpop.xlane.xlu0 %1757  ;;  %v1941_v55 = vmul.f32 0.25, %v3955_v35  ;;  %v2019_v21 = vrot.slane %v3955_v35, 5 }
 0x55f   : > { %v2194_v44 = vsel %vm2007_vm13, %v2193_v34, %v2192_v9  ;;  %v1936_v61 = vmul.f32 0.25, %v1758_v36  ;;  %v2009_v45 = vrot.slane %v1758_v36, 2 }
 0x560   : > { %v2203_v49 = vrot.slane %v1941_v55, 5 }
 0x561   : > { %v2195_v50 = vrot.slane %v1936_v61, 2  ;;  %v3958_v22 = vpop.xlane.xlu1 %1778  ;;  %v2011_v38 = vsel %vm2010_vm9, %v2009_v45, %v2008_v54 }
 0x562   : > { %v1860_v26 = vpop.xlane.xlu0 %1859  ;;  %v1943_v10 = vmul.f32 0.25, %v3958_v22  ;;  %v2023_v11 = vrot.slane %v3958_v22, 3 }
 0x563   : > { %v3962_v2 = vsel %vm2010_vm9, %v2195_v50, %v2194_v44  ;;  %v2108_v51 = vsel %vm1995_vm15, %v2107_v18, %v1860_v26 }
 0x564   : > { %v2110_v8 = vsel %vm1998_vm1, %v2109_v14, %v2108_v51  ;;  %v2207_v12 = vrot.slane %v1943_v10, 3 }
 0x565   : > { %v3966_v7 = vpop.xlane.xlu1 %1781 }
 0x566   : > { %v1851_v53 = vpop.xlane.xlu0 %1850  ;;  %v1944_v17 = vmul.f32 0.25, %v3966_v7  ;;  %v2025_v18 = vrot.slane %v3966_v7, 2 }
 0x567   : > { %v2101_v3 = vrot.slane %v1851_v53, 3 }
 0x568   : > { %v2209_v22 = vrot.slane %v1944_v17, 2 }
 0x569   : > { %v2102_v60 = vsel %vm2007_vm13, %v2101_v3, %v2100_v28  ;;  %v1869_v41 = vpop.xlane.xlu1 %1868 }
 0x56a   : > { %v2111_v6 = vrot.slane %v1869_v41, 5  ;;  %v1854_v37 = vpop.xlane.xlu0 %1853 }
 0x56b   : > { %v2103_v39 = vrot.slane %v1854_v37, 2 }
 0x56c   : > { %v2112_v4 = vsel %vm2001_vm2, %v2111_v6, %v2110_v8 }
 0x56d   : > { %v2104_v56 = vsel %vm2010_vm9, %v2103_v39, %v2102_v60  ;;  %v2114_v62 = vsel %vm2004_vm3, %v2113_v30, %v2112_v4  ;;  %v1875_v57 = vpop.xlane.xlu1 %1874 }
 0x56e   : > { %v2115_v13 = vrot.slane %v1875_v57, 3  ;;  %v1767_v9 = vpop.xlane.xlu0 %1766 }
 0x56f   : > { %v1939_v19 = vmul.f32 0.25, %v1767_v9  ;;  %v2015_v20 = vrot.slane %v1767_v9, 7 }
 0x570   : > { %v2116_v23 = vsel %vm2007_vm13, %v2115_v13, %v2114_v62 }
 0x571   : > { %v2016_v31 = vsel %vm1995_vm15, %v2015_v20, %v3953_v29  ;;  %v2199_v24 = vrot.slane %v1939_v19, 7  ;;  %v1878_v28 = vpop.xlane.xlu1 %1877 }
 0x572   : > { %v2018_v32 = vsel %vm1998_vm1, %v2017_v43, %v2016_v31  ;;  %v2117_v33 = vrot.slane %v1878_v28, 2  ;;  %v1761_v34 = vpop.xlane.xlu0 %1760 }
 0x573   : > { %v2020_v35 = vsel %vm2001_vm2, %v2019_v21, %v2018_v32  ;;  %v2200_v36 = vsel %vm1995_vm15, %v2199_v24, %v1938_v5  ;;  %v1937_v44 = vmul.f32 0.25, %v1761_v34  ;;  %v2012_v61 = vrot.slane %v1761_v34, 1 }
 0x574   : > { %v2202_v50 = vsel %vm1998_vm1, %v2201_v58, %v2200_v36  ;;  %v2118_v29 = vsel %vm2010_vm9, %v2117_v33, %v2116_v23  ;;  %v2022_v14 = vsel %vm2004_vm3, %v2021_v59, %v2020_v35 }
 0x575   : > { %v2204_v26 = vsel %vm2001_vm2, %v2203_v49, %v2202_v50  ;;  %v2197_v40 = vrot.slane %v1937_v44, 1  ;;  %v2024_v51 = vsel %vm2007_vm13, %v2023_v11, %v2022_v14  ;;  %v1785_v47 = vpop.xlane.xlu1 %1784  ;;  %v2014_v27 = vsel %vm2013_vm5, %v2012_v61, %v2011_v38 }
 0x576   : > { %v2026_v8 = vsel %vm2010_vm9, %v2025_v18, %v2024_v51  ;;  %v2206_v53 = vsel %vm2004_vm3, %v2205_v16, %v2204_v26  ;;  %v1945_v46 = vmul.f32 0.25, %v1785_v47  ;;  %v2027_v3 = vrot.slane %v1785_v47, 1  ;;  %v1857_v7 = vpop.xlane.xlu0 %1856 }
 0x577   : > { %v4008_v63 = vsel %vm2013_vm5, %v2197_v40, %v3962_v2  ;;  %v2208_v0 = vsel %vm2007_vm13, %v2207_v12, %v2206_v53  ;;  %v2105_v6 = vrot.slane %v1857_v7, 1 }
 0x578   : > { %v2210_v60 = vsel %vm2010_vm9, %v2209_v22, %v2208_v0  ;;  %v2028_v41 = vsel %vm2013_vm5, %v2027_v3, %v2026_v8  ;;  %v2211_v25 = vrot.slane %v1945_v46, 1 }
 0x579   : > { %v2643_v37 = vpack.c.bf16 %v2028_v41, %v2014_v27  ;;  %v1881_v1 = vpop.xlane.xlu1 %1880  ;;  %v4019_v52 = vsel %vm2013_vm5, %v2105_v6, %v2104_v56 }
 0x57a   : > { %v4014_v48 = vsel %vm2013_vm5, %v2211_v25, %v2210_v60  ;;  %v2119_v30 = vrot.slane %v1881_v1, 1  ;;  %v1788_v39 = vpop.xlane.xlu0 %1787 }
 0x57b   : > { %2644 = vmatpush3.bf16.msra.mxu0 %v2643_v37  ;;  %v2655_v2 = vpack.c.bf16 %v4014_v48, %v4008_v63  ;;  %v1946_v34 = vmul.f32 0.25, %v1788_v39 }
 0x57c   : > { %v4022_v42 = vsel %vm2013_vm5, %v2119_v30, %v2118_v29  ;;  %2645 = vmatprep.subr.bf16.mxu0 %v2819_v15 }
 0x57d   : > { %v2649_v55 = vpack.c.bf16 %v4022_v42, %v4019_v52  ;;  %v1797_v4 = vpop.xlane.xlu1 %1796 }
 0x57e   : > { %v1884_v43 = vpop.xlane.xlu0 %1883  ;;  %v4047_v44 = vmul.f32 0.25, %v1797_v4  ;;  %v2033_v14 = vrot.slane %v1797_v4, 5 }
 0x581   : > { %v4027_v45 = vpop.xlane.xlu1 %1892 }
 0x582   : > { %v1791_v62 = vpop.xlane.xlu0 %1790  ;;  %v2125_v51 = vrot.slane %v4027_v45, 5 }
 0x583   : > { %v1947_v17 = vmul.f32 0.25, %v1791_v62  ;;  %v2029_v24 = vrot.slane %v1791_v62, 7 }
 0x585   : > { %v1815_v57 = vpop.xlane.xlu1 %1814  ;;  %v2213_v32 = vrot.slane %v1947_v17, 7  ;;  %v2030_v61 = vsel %vm1995_vm15, %v2029_v24, %v1788_v39 }
 0x586   : > { %v1794_v58 = vpop.xlane.xlu0 %1793  ;;  %v2043_v33 = vrot.slane %v1815_v57, 7  ;;  %v1955_v35 = vmul.f32 0.25, %v1815_v57 }
 0x587   : > { %v1948_v11 = vmul.f32 0.25, %v1794_v58  ;;  %v2031_v12 = vrot.slane %v1794_v58, 6  ;;  %v2214_v47 = vsel %vm1995_vm15, %v2213_v32, %v1946_v34 }
 0x588   : > { %v2227_v46 = vrot.slane %v1955_v35, 7 }
 0x589   : > { %v1818_v59 = vpop.xlane.xlu1 %1817  ;;  %v2032_v22 = vsel %vm1998_vm1, %v2031_v12, %v2030_v61  ;;  %v2215_v26 = vrot.slane %v1948_v11, 6 }
 0x58a   : > { %v4029_v10 = vpop.xlane.xlu0 %1799  ;;  %v2045_v40 = vrot.slane %v1818_v59, 6  ;;  %v1956_v60 = vmul.f32 0.25, %v1818_v59  ;;  %v2034_v41 = vsel %vm2001_vm2, %v2033_v14, %v2032_v22 }
 0x58b   : > { %v2035_v8 = vrot.slane %v4029_v10, 4  ;;  %v4063_v1 = vsel %vm1998_vm1, %v2215_v26, %v2214_v47 }
 0x58c   : > { %v2229_v22 = vrot.slane %v1956_v60, 6 }
 0x58d   : > { %v4031_v56 = vpop.xlane.xlu1 %1823  ;;  %v2036_v45 = vsel %vm2004_vm3, %v2035_v8, %v2034_v41 }
 0x58e   : > { %v1887_v13 = vpop.xlane.xlu0 %1886  ;;  %v2049_v30 = vrot.slane %v4031_v56, 4 }
 0x58f   : > { %v2121_v53 = vrot.slane %v1887_v13, 7 }
 0x591   : > { %v1911_v9 = vpop.xlane.xlu1 %1910  ;;  %v2122_v62 = vsel %vm1995_vm15, %v2121_v53, %v1884_v43 }
 0x592   : > { %v1890_v16 = vpop.xlane.xlu0 %1889  ;;  %v2135_v57 = vrot.slane %v1911_v9, 7 }
 0x593   : > { %v2123_v3 = vrot.slane %v1890_v16, 6 }
 0x595   : > { %v4033_v5 = vpop.xlane.xlu1 %1913  ;;  %v2124_v59 = vsel %vm1998_vm1, %v2123_v3, %v2122_v62 }
 0x596   : > { %v4035_v19 = vpop.xlane.xlu0 %1895  ;;  %v2137_v35 = vrot.slane %v4033_v5, 6 }
 0x599   : > { %v4037_v20 = vpop.xlane.xlu1 %1919 }
 0x59a   : > { %v1812_v54 = vpop.xlane.xlu0 %1811 }
 0x59b   : > { %v2044_v18 = vsel %vm1995_vm15, %v2043_v33, %v1812_v54  ;;  %v1954_v13 = vmul.f32 0.25, %v1812_v54  ;;  %v1950_v54 = vmul.f32 0.25, %v4029_v10 }
 0x59c   : > { %v2046_v7 = vsel %vm1998_vm1, %v2045_v40, %v2044_v18  ;;  %v2127_v18 = vrot.slane %v4035_v19, 4  ;;  %v2141_v19 = vrot.slane %v4037_v20, 4 }
 0x59d   : > { %v1821_v21 = vpop.xlane.xlu1 %1820 }
 0x59e   : > { %v4039_v49 = vpop.xlane.xlu0 %1802  ;;  %v2047_v50 = vrot.slane %v1821_v21, 5  ;;  %v1957_v43 = vmul.f32 0.25, %v1821_v21  ;;  %v2228_v21 = vsel %vm1995_vm15, %v2227_v46, %v1954_v13 }
 0x59f   : > { %v2037_v27 = vrot.slane %v4039_v49, 3  ;;  %v2230_v46 = vsel %vm1998_vm1, %v2229_v22, %v2228_v21 }
 0x5a0   : > { %v2048_v25 = vsel %vm2001_vm2, %v2047_v50, %v2046_v7  ;;  %v2231_v53 = vrot.slane %v1957_v43, 5 }
 0x5a1   : > { %v4041_v23 = vpop.xlane.xlu1 %1826  ;;  %v2038_v16 = vsel %vm2007_vm13, %v2037_v27, %v2036_v45  ;;  %v2050_v17 = vsel %vm2004_vm3, %v2049_v30, %v2048_v25 }
 0x5a2   : > { %v4043_v38 = vpop.xlane.xlu0 %1805  ;;  %v2051_v6 = vrot.slane %v4041_v23, 3  ;;  %v1959_v60 = vmul.f32 0.25, %v4041_v23  ;;  %v2232_v23 = vsel %vm2001_vm2, %v2231_v53, %v2230_v46 }
 0x5a3   : > { %v2039_v39 = vrot.slane %v4043_v38, 2 }
 0x5a4   : > { %v2052_v11 = vsel %vm2007_vm13, %v2051_v6, %v2050_v17  ;;  %v2217_v17 = vrot.slane %v4047_v44, 5 }
 0x5a5   : > { %v4045_v31 = vpop.xlane.xlu1 %1829  ;;  %v2040_v9 = vsel %vm2010_vm9, %v2039_v39, %v2038_v16 }
 0x5a6   : > { %v1908_v28 = vpop.xlane.xlu0 %1907  ;;  %v2053_v4 = vrot.slane %v4045_v31, 2  ;;  %v2218_v42 = vsel %vm2001_vm2, %v2217_v17, %v4063_v1 }
 0x5a7   : > { %v2136_v12 = vsel %vm1995_vm15, %v2135_v57, %v1908_v28  ;;  %v2126_v28 = vsel %vm2001_vm2, %v2125_v51, %v2124_v59  ;;  %v1958_v51 = vmul.f32 0.25, %v4031_v56  ;;  %v2219_v59 = vrot.slane %v1950_v54, 4 }
 0x5a8   : > { %v2054_v61 = vsel %vm2010_vm9, %v2053_v4, %v2052_v11  ;;  %v2128_v27 = vsel %vm2004_vm3, %v2127_v18, %v2126_v28  ;;  %v1952_v4 = vmul.f32 0.25, %v4043_v38 }
 0x5a9   : > { %v1917_v36 = vpop.xlane.xlu1 %1916  ;;  %v2233_v13 = vrot.slane %v1958_v51, 4 }
 0x5aa   : > { %v4051_v29 = vpop.xlane.xlu0 %1898  ;;  %v2139_v32 = vrot.slane %v1917_v36, 5  ;;  %v2138_v36 = vsel %vm1998_vm1, %v2137_v35, %v2136_v12  ;;  %v2223_v52 = vrot.slane %v1952_v4, 2 }
 0x5ab   : > { %v2129_v47 = vrot.slane %v4051_v29, 3  ;;  %v1951_v29 = vmul.f32 0.25, %v4039_v49  ;;  %v2235_v49 = vrot.slane %v1959_v60, 3  ;;  %v2234_v12 = vsel %vm2004_vm3, %v2233_v13, %v2232_v23 }
 0x5ac   : > { %v2140_v40 = vsel %vm2001_vm2, %v2139_v32, %v2138_v36  ;;  %v2220_v32 = vsel %vm2004_vm3, %v2219_v59, %v2218_v42 }
 0x5ad   : > { %v1923_v0 = vpop.xlane.xlu1 %1922  ;;  %v2142_v20 = vsel %vm2004_vm3, %v2141_v19, %v2140_v40  ;;  %v2130_v6 = vsel %vm2007_vm13, %v2129_v47, %v2128_v27 }
 0x5ae   : > { %v1809_v37 = vpop.xlane.xlu0 %1808  ;;  %v2143_v10 = vrot.slane %v1923_v0, 3  ;;  %v1960_v0 = vmul.f32 0.25, %v4045_v31 }
 0x5af   : > { %v2041_v58 = vrot.slane %v1809_v37, 1  ;;  %v1953_v31 = vmul.f32 0.25, %v1809_v37 }
 0x5b0   : > { %v2144_v56 = vsel %vm2007_vm13, %v2143_v10, %v2142_v20  ;;  %v2237_v16 = vrot.slane %v1960_v0, 2 }
 0x5b1   : > { %v1833_v24 = vpop.xlane.xlu1 %1832  ;;  %v2042_v50 = vsel %vm2013_vm5, %v2041_v58, %v2040_v9  ;;  %v2225_v37 = vrot.slane %v1953_v31, 1  ;;  %v2245_v9 = vld [vmem:[%s4178_s1 + $0xb0] sm:$0xf] }
 0x5b2   : > { %v2055_v33 = vrot.slane %v1833_v24, 1  ;;  %v1902_v34 = vpop.xlane.xlu0 %1901  ;;  %v1961_v30 = vmul.f32 0.25, %v1833_v24  ;;  %v2221_v24 = vrot.slane %v1951_v29, 3 }
 0x5b3   : > { %v2131_v3 = vrot.slane %v1902_v34, 2 }
 0x5b4   : > { %v2056_v14 = vsel %vm2013_vm5, %v2055_v33, %v2054_v61  ;;  %v2239_v11 = vrot.slane %v1961_v30, 1  ;;  %v2222_v44 = vsel %vm2007_vm13, %v2221_v24, %v2220_v32  ;;  %v2246_v61 = vld [vmem:[%s4178_s1 + $0xb8] sm:$0xf] }
 0x5b5   : > { %v2646_v26 = vpack.c.bf16 %v2056_v14, %v2042_v50  ;;  %v1926_v5 = vpop.xlane.xlu1 %1925  ;;  %v2132_v45 = vsel %vm2010_vm9, %v2131_v3, %v2130_v6  ;;  %v2224_v35 = vsel %vm2010_vm9, %v2223_v52, %v2222_v44 }
 0x5b6   : > { %v1905_v8 = vpop.xlane.xlu0 %1904  ;;  %v2145_v7 = vrot.slane %v1926_v5, 2  ;;  %v2226_v1 = vsel %vm2013_vm5, %v2225_v37, %v2224_v35 }
 0x5b7   : > { %2647 = vmatpush3.bf16.msra.mxu0 %v2646_v26  ;;  %v2133_v41 = vrot.slane %v1905_v8, 1 }
 0x5b8   : > { %2648 = vmatprep.subr.bf16.mxu0 %v2819_v15  ;;  %v2146_v62 = vsel %vm2010_vm9, %v2145_v7, %v2144_v56 }
 0x5b9   : > { %v1929_v25 = vpop.xlane.xlu1 %1928  ;;  %v2134_v57 = vsel %vm2013_vm5, %v2133_v41, %v2132_v45 }
 0x5ba   : > { %v2147_v39 = vrot.slane %v1929_v25, 1 }
 0x5bb   : > { %2650 = vmatpush3.bf16.msra.mxu0 %v2649_v55  ;;  %v2236_v55 = vsel %vm2007_vm13, %v2235_v49, %v2234_v12 }
 0x5bc   : > { %v2148_v58 = vsel %vm2013_vm5, %v2147_v39, %v2146_v62  ;;  %2651 = vmatprep.subr.bf16.mxu0 %v2819_v15  ;;  %v2238_v33 = vsel %vm2010_vm9, %v2237_v16, %v2236_v55 }
 0x5bd   : > { %v2652_v38 = vpack.c.bf16 %v2148_v58, %v2134_v57  ;;  %v2240_v34 = vsel %vm2013_vm5, %v2239_v11, %v2238_v33 }
 0x5be   : > { %v2658_v43 = vpack.c.bf16 %v2240_v34, %v2226_v1 }
 0x5bf   : > { %2653 = vmatpush3.bf16.msra.mxu0 %v2652_v38 }
 0x5c0   : > { %2654 = vmatprep.subr.bf16.mxu0 %v2819_v15 }
 0x5c3   : > { %2656 = vmatpush3.bf16.msra.mxu0 %v2655_v2 }
 0x5c4   : > { %2657 = vmatprep.subr.bf16.mxu0 %v2819_v15 }
 0x5c7   : > { %2659 = vmatpush3.bf16.msra.mxu0 %v2658_v43 }
 0x5ca   : > { %2568 = vmatmul.mubr.msk.f32.vlgmr.msra.gmra.mrb[16].mxu0 %vm2247_vm6, %v2245_v9 }
 0x69d   : > { %v2317_v54 = vpop.f32.mrb[16].mxu0 }
 0x69e   : > { %v2318_v63 = vadd.f32 %v2317_v54, %v2246_v61  ;;  %v2569_v48 = vpop.f32.mrb[17].mxu0 }
 0x6a0   : > { %v2322_v2 = vsel %vm2321_vm0, %v2318_v63, -inf }
 0x6a1   : > { %v2323_v18 = vrot.slane %v2322_v2, 4 }
 0x6a3   : > { %v2324_v50 = vmax.f32 %v2322_v2, %v2323_v18 }
 0x6a5   : > { %v2325_v15 = vrot.slane %v2324_v50, 2 }
 0x6a7   : > { %v2326_v14 = vmax.f32 %v2324_v50, %v2325_v15 }
 0x6a9   : > { %v2327_v22 = vrot.slane %v2326_v14, 1 }
 0x6ab   : > { %v2328_v28 = vmax.f32 %v2326_v14, %v2327_v22 }
 0x6ad   : > { %v2329_v36 = vsub.f32 %v2318_v63, %v2328_v28 }
 0x6af   : > { %v2330_v26 = vmul.f32 1.442695, %v2329_v36 }
 0x6b1   : > { %2736 = vpow2.f32 %v2330_v26 }
 0x6bb   : > { %v2737_v5 = vpop.eup %2736 }
 0x6bc   : > { %v2332_v21 = vsel %vm2321_vm0, %v2737_v5, 0.0 }
 0x6bd   : > { %v2333_v40 = vrot.slane %v2332_v21, 4 }
 0x6bf   : > { %v2334_v47 = vadd.f32 %v2333_v40, %v2332_v21 }
 0x6c1   : > { %v2335_v10 = vrot.slane %v2334_v47, 2 }
 0x6c3   : > { %v2336_v8 = vadd.f32 %v2335_v10, %v2334_v47 }
 0x6c5   : > { %v2337_v19 = vrot.slane %v2336_v8, 1 }
 0x6c7   : > { %v2338_v53 = vadd.f32 %v2337_v19, %v2336_v8 }
 0x6c9   : > { %2738 = vrcp.f32 %v2338_v53 }
 0x6d3   : > { %v2739_v3 = vpop.eup %2738 }
 0x6d4   : > { %v2340_v7 = vmul.f32 %v2739_v3, %v2737_v5 }
 0x6d6   : > { %v2342_v51 = vsel %vm2341_vm7, %v2340_v7, 0.0 }
 0x6d7   : > { %v2344_v27 = vsel %vm2343_vm12, %v2342_v51, 0.0 }
 0x6d8   : > { %2345 = vst [vmem:[%s161_s17] sm:$0xff] %v2344_v27 }
 0x6d9   : > { %2753 = shalt.err (!%p2750_p3)
}
 0x6da   : > { %s2754_s27 = scalar_lea.hbm %s4135_s19, 128  ;;  %s2758_s30 = scalar_lea.hbm %s4180_s3, 256 }
 0x6db   : > { %p2755_p4 = scmp.ne.s32.totalorder %s4135_s19, %s2754_s27  ;;  %p2759_p9 = scmp.lt.u32.totalorder %s4135_s19, %s4180_s3 }
 0x6dc   : > { %p2760_p10 = scmp.lt.u32.totalorder %s2758_s30, %s2754_s27  ;;  %p2762_p12 = scmp.lt.u32.totalorder %s2754_s27, %s4135_s19 }
 0x6dd   : > { %p2756_p7 = pnand %p2755_p4, %p2880_p5 }
 0x6de   : > { %p2761_p11 = por %p2760_p10, %p2759_p9 }
 0x6df   : > { %p2757_p8 = pneg %p2756_p7 }
 0x6e0   : > { %p2763_p13 = por %p2762_p12, %p2761_p11 }
 0x6e2   : > { %p2764_p0 = pnand %p2763_p13, %p2757_p8 }
 0x6e4   : > { %2767 = shalt.err (!%p2764_p0)
}
 0x6e5   : > { %2660 = dma.vmem_to_hbm [thread:$0]  (%p2880_p5), %s4137_s6, 128, %s4135_s19, %s2347_s20  }
 0x6e6 PF: > { %p2666_p1 = scmp.ge.s32.totalorder %s2802_s15, 2  ;;  %s2372_s5 = sand.u32 1, %s2790_s12  }
 0x6e7   : > { %s2373_s10 = scalar_lea.sflag [#allocation3], %s2372_s5 }
 0x6e8   : > { %p2663_p2 = pnand %p2666_p1, %p2884_p6 }
 0x6ea   : > { %2785 = dma.done.wait (!%p2663_p2), %s2373_s10, 128  }
 0x6eb   : > { %2787 = vsyncadd (!%p2663_p2), %s2373_s10, 4294967168  ;;  %p13_p3 = scmp.ge.s32.totalorder %s2867_s18, 4   ;;  %s4199_s12 = smov %s2794_s13 }
 0x6ec   : > { %s4200_s13 = smov %s2798_s14  ;;  %s4201_s14 = smov %s2878_s21 }
 0x6ed   : > { %s4202_s15 = smov %s2867_s18  ;;  %15 = sbr.rel (!%p13_p3) target bundleno = 3 (0x3), region = 67 }
 0x6f4   :  { %2378 = vsyncpa [#allocation3], 1 }
 0x6f5   :  { %2380 = vsyncpa [#allocation3 + $0x1], 1 }

</bundles_post_ra>
